<compile_context>
chip_gen: v6e
topology: v6e:2x2x1
jax: 0.10.0
libtpu: 0.0.40
codegen_flags: <defaults>
</compile_context>

<pallas_src>
import jax
import jax.numpy as jnp
from jax.experimental import pallas as pl
from jax.scipy.linalg import block_diag

LANE = 128  # TPU lane width; all output-facing segments are padded to this.


# ----------------------------------------------------------------------------
# One-time weight preparation (runs once in CorVAEConvPallas.__init__).
# ----------------------------------------------------------------------------
def _conv_band(w, b, d):
    """PyTorch Conv1d(Cin->Cout, K, padding=(K-1)//2) on length-d signals expressed as
    a dense (Cin*d, Cout*d) band matrix acting on the channel-major flatten, plus an
    expanded bias (Cout*d,)."""
    w = jnp.asarray(w, jnp.float32)
    b = jnp.asarray(b, jnp.float32)
    c_out, c_in, k = w.shape
    pad = (k - 1) // 2
    li = jnp.arange(d)[:, None]                      # input position
    lo = jnp.arange(d)[None, :]                      # output position
    tap = li - lo + pad                              # cross-correlation tap index
    valid = (tap >= 0) & (tap < k)
    tap_c = jnp.clip(tap, 0, k - 1)
    wt = jnp.transpose(w, (1, 0, 2))                 # (Cin, Cout, K)
    m = jnp.where(valid[None, None], wt[:, :, tap_c], 0.0)   # (Cin, Cout, d, d)
    m = jnp.transpose(m, (0, 2, 1, 3)).reshape(c_in * d, c_out * d)
    b_exp = jnp.broadcast_to(b[:, None], (c_out, d)).reshape(c_out * d)
    return m, b_exp


def _prep_branch(p, d, ld):
    """Per-branch prepped matrices; output-facing dims (latent, recon) padded to LANE."""
    assert d <= LANE and ld <= LANE, "this toy implementation assumes dims <= 128"
    w1, b1 = _conv_band(p["ec1_w"], p["ec1_b"], d)           # (d, c1*d)
    w2, b2 = _conv_band(p["ec2_w"], p["ec2_b"], d)           # (c1*d, c2*d)
    wm = jnp.pad(jnp.asarray(p["fcm_w"], jnp.float32).T, ((0, 0), (0, LANE - ld)))
    bm = jnp.pad(jnp.asarray(p["fcm_b"], jnp.float32), (0, LANE - ld))
    wv = jnp.pad(jnp.asarray(p["fcv_w"], jnp.float32).T, ((0, 0), (0, LANE - ld)))
    bv = jnp.pad(jnp.asarray(p["fcv_b"], jnp.float32), (0, LANE - ld))
    wd = jnp.pad(jnp.asarray(p["fcd_w"], jnp.float32).T, ((0, LANE - ld), (0, 0)))
    bd = jnp.asarray(p["fcd_b"], jnp.float32)
    w3, b3 = _conv_band(p["dc1_w"], p["dc1_b"], d)           # (c2*d, c1*d)
    w4, b4 = _conv_band(p["dc2_w"], p["dc2_b"], d)           # (c1*d, d)
    w4 = jnp.pad(w4, ((0, 0), (0, LANE - d)))                # recon segment -> 128 lanes
    b4 = jnp.pad(b4, (0, LANE - d))
    return dict(w1=w1, b1=b1, w2=w2, b2=b2, wm=wm, bm=bm, wv=wv, bv=bv,
                wd=wd, bd=bd, w3=w3, b3=b3, w4=w4, b4=b4)


def _pack_biases(biases):
    """Concatenate bias vectors into one (1, total) f32 array with 128-aligned offsets."""
    segs, offs, lens = [], [], []
    off = 0
    for b in biases:
        n = int(b.shape[0])
        n_pad = -(-n // LANE) * LANE
        offs.append(off)
        lens.append(n)
        segs.append(jnp.pad(b, (0, n_pad - n)))
        off += n_pad
    packed = jnp.concatenate(segs).astype(jnp.float32).reshape(1, off)
    return packed, tuple(offs), tuple(lens)


def _prepare_corvae(params_x, params_y, dx, dy, ldx, ldy):
    """Assemble block-diagonal (both branches fused) bf16 weight matrices + packed bias."""
    px = _prep_branch(params_x, dx, ldx)
    py = _prep_branch(params_y, dy, ldy)
    w1 = block_diag(px["w1"], py["w1"])                      # (dx+dy, c1*dt)
    w2 = block_diag(px["w2"], py["w2"])                      # (c1*dt, c2*dt)
    wh = jnp.concatenate([block_diag(px["wm"], py["wm"]),    # cols: [mean_x|mean_y|lv_x|lv_y]
                          block_diag(px["wv"], py["wv"])], axis=1)   # (c2*dt, 4*LANE)
    wd = block_diag(px["wd"], py["wd"])                      # (2*LANE, c2*dt)
    w3 = block_diag(px["w3"], py["w3"])                      # (c2*dt, c1*dt)
    w4 = block_diag(px["w4"], py["w4"])                      # (c1*dt, 2*LANE)
    b1 = jnp.concatenate([px["b1"], py["b1"]])
    b2 = jnp.concatenate([px["b2"], py["b2"]])
    bh = jnp.concatenate([px["bm"], py["bm"], px["bv"], py["bv"]])
    bd = jnp.concatenate([px["bd"], py["bd"]])
    b3 = jnp.concatenate([px["b3"], py["b3"]])
    b4 = jnp.concatenate([px["b4"], py["b4"]])
    bias, offs, lens = _pack_biases([b1, b2, bh, bd, b3, b4])
    weights = tuple(w.astype(jnp.bfloat16) for w in (w1, w2, wh, wd, w3, w4))
    return weights, bias, offs, lens


# ----------------------------------------------------------------------------
# The fused kernel: whole CorVAEConv forward, everything resident in VMEM/vregs.
# ----------------------------------------------------------------------------
def _build_kernel(bias_offs, bias_lens):
    o1, o2, oh, od, o3, o4 = bias_offs
    n1, n2, nh, nd, n3, n4 = bias_lens

    def kernel(x_ref, eps_ref, w1_ref, w2_ref, wh_ref, wd_ref, w3_ref, w4_ref,
               b_ref, out_ref):
        def mm(a, w_ref):
            # bf16 x bf16 MXU matmul with f32 accumulation.
            return jnp.dot(a.astype(jnp.bfloat16), w_ref[...],
                           preferred_element_type=jnp.float32)

        def bias(off, n):
            return b_ref[:, off:off + n]            # (1, n) f32; off is 128-aligned

        # ---- encoder: two "same" K=3 convs as band-matrix matmuls ----
        h = jnp.maximum(mm(x_ref[...], w1_ref) + bias(o1, n1), 0.0)   # (B, c1*dt)
        h = jnp.maximum(mm(h, w2_ref) + bias(o2, n2), 0.0)            # (B, c2*dt)

        # ---- fused mean|log_var heads + reparameterization ----
        heads = mm(h, wh_ref) + bias(oh, nh)        # (B, 4*128) = [m_x|m_y|lv_x|lv_y]
        mean = heads[:, 0:2 * LANE]
        log_var = heads[:, 2 * LANE:4 * LANE]
        std = jnp.exp(0.5 * log_var)                # single EUP exp
        var = std * std
        z = mean + std * eps_ref[...]               # (B, 2*128)

        # ---- decoder ----
        d = jnp.maximum(mm(z, wd_ref) + bias(od, nd), 0.0)            # (B, c2*dt)
        d = jnp.maximum(mm(d, w3_ref) + bias(o3, n3), 0.0)            # (B, c1*dt)
        recon = mm(d, w4_ref) + bias(o4, n4)                          # (B, 2*128)

        # ---- one lane-dense output slab; every segment offset is 128-aligned ----
        out_ref[:, 0:2 * LANE] = recon
        out_ref[:, 2 * LANE:4 * LANE] = z
        out_ref[:, 4 * LANE:6 * LANE] = mean
        out_ref[:, 6 * LANE:8 * LANE] = var
        out_ref[:, 8 * LANE:10 * LANE] = log_var

    return kernel


# ----------------------------------------------------------------------------
# CorVAEConv wrapper: prep once, jitted grid-free pallas_call per forward.
# ----------------------------------------------------------------------------
class CorVAEConvPallas:
    def __init__(self, params_x, params_y, input_dim_x, input_dim_y,
                 latent_dim_x, latent_dim_y):
        self.dx, self.dy = int(input_dim_x), int(input_dim_y)
        self.ldx, self.ldy = int(latent_dim_x), int(latent_dim_y)
        # One-time prep; the resulting arrays are closed over by the jitted forward
        # and therefore become compile-time constants (no per-forward prep ops).
        (self.weights, self.bias,
         self.bias_offs, self.bias_lens) = _prepare_corvae(
            params_x, params_y, self.dx, self.dy, self.ldx, self.ldy)
        self._kernel = _build_kernel(self.bias_offs, self.bias_lens)
        self._fwd = jax.jit(self._forward)

    def _forward(self, x, y, eps_x, eps_y):
        B = x.shape[0]
        x_cat = jnp.concatenate([x.astype(jnp.float32), y.astype(jnp.float32)], axis=1)
        eps_slab = jnp.concatenate(
            [jnp.pad(eps_x.astype(jnp.float32), ((0, 0), (0, LANE - self.ldx))),
             jnp.pad(eps_y.astype(jnp.float32), ((0, 0), (0, LANE - self.ldy)))],
            axis=1)                                             # (B, 2*128)

        # Grid-free pallas_call: default whole-array BlockSpecs place every operand
        # (inputs, bf16 weights, packed bias, output slab) fully in VMEM — ~1.2 MB of
        # weights, far under the VMEM budget of every TPU generation.
        slab = pl.pallas_call(
            self._kernel,
            out_shape=jax.ShapeDtypeStruct((B, 10 * LANE), jnp.float32),
        )(x_cat, eps_slab, *self.weights, self.bias)

        dx, dy, ldx, ldy = self.dx, self.dy, self.ldx, self.ldy
        ox = slab[:, 0 * LANE:0 * LANE + dx]
        oy = slab[:, 1 * LANE:1 * LANE + dy]
        zx = slab[:, 2 * LANE:2 * LANE + ldx]
        zy = slab[:, 3 * LANE:3 * LANE + ldy]
        mx = slab[:, 4 * LANE:4 * LANE + ldx]
        my = slab[:, 5 * LANE:5 * LANE + ldy]
        vx = slab[:, 6 * LANE:6 * LANE + ldx]
        vy = slab[:, 7 * LANE:7 * LANE + ldy]
        lvx = slab[:, 8 * LANE:8 * LANE + ldx]
        lvy = slab[:, 9 * LANE:9 * LANE + ldy]
        return (ox, zx, mx, vx, lvx, oy, zy, my, vy, lvy)

    def __call__(self, x, y, eps_x, eps_y):
        return self._fwd(x, y, eps_x, eps_y)


# ----------------------------------------------------------------------------
# Deterministic parameter init (PyTorch-like uniform(-1/sqrt(fan_in), +...))
# ----------------------------------------------------------------------------
def init_vae_params(key, input_dim, latent_dim, c1=8, c2=16):
    ks = jax.random.split(key, 14)

    def u(k, shape, fan_in):
        bound = 1.0 / float(fan_in) ** 0.5
        return jax.random.uniform(k, shape, jnp.float32, -bound, bound)

    K = 3
    return {
        "ec1_w": u(ks[0], (c1, 1, K), 1 * K),
        "ec1_b": u(ks[1], (c1,), 1 * K),
        "ec2_w": u(ks[2], (c2, c1, K), c1 * K),
        "ec2_b": u(ks[3], (c2,), c1 * K),
        "fcm_w": u(ks[4], (latent_dim, c2 * input_dim), c2 * input_dim),
        "fcm_b": u(ks[5], (latent_dim,), c2 * input_dim),
        "fcv_w": u(ks[6], (latent_dim, c2 * input_dim), c2 * input_dim),
        "fcv_b": u(ks[7], (latent_dim,), c2 * input_dim),
        "fcd_w": u(ks[8], (c2 * input_dim, latent_dim), latent_dim),
        "fcd_b": u(ks[9], (c2 * input_dim,), latent_dim),
        "dc1_w": u(ks[10], (c1, c2, K), c2 * K),
        "dc1_b": u(ks[11], (c1,), c2 * K),
        "dc2_w": u(ks[12], (1, c1, K), c1 * K),
        "dc2_b": u(ks[13], (1,), c1 * K),
    }


# ----------------------------------------------------------------------------
# Pure-JAX reference (independent formulation) used only for in-script checking.
# ----------------------------------------------------------------------------
def _ref_conv1d(x, w, b):
    B, c_in, L = x.shape
    c_out, _, K = w.shape
    pad = (K - 1) // 2
    xp = jnp.pad(x, ((0, 0), (0, 0), (pad, pad)))
    out = jnp.broadcast_to(b[None, :, None], (B, c_out, L)).astype(jnp.float32)
    for k in range(K):
        out = out + jnp.einsum("oi,bil->bol", w[:, :, k], xp[:, :, k:k + L])
    return out


def _ref_vae_forward(p, x, eps):
    B, D = x.shape
    c2 = p["ec2_w"].shape[0]
    h = jnp.maximum(_ref_conv1d(x[:, None, :], p["ec1_w"], p["ec1_b"]), 0.0)
    h = jnp.maximum(_ref_conv1d(h, p["ec2_w"], p["ec2_b"]), 0.0)
    hf = h.reshape(B, -1)
    mean = hf @ p["fcm_w"].T + p["fcm_b"]
    log_var = hf @ p["fcv_w"].T + p["fcv_b"]
    var = jnp.exp(log_var)
    z = mean + jnp.exp(0.5 * log_var) * eps
    d = jnp.maximum(z @ p["fcd_w"].T + p["fcd_b"], 0.0).reshape(B, c2, D)
    d = jnp.maximum(_ref_conv1d(d, p["dc1_w"], p["dc1_b"]), 0.0)
    out = _ref_conv1d(d, p["dc2_w"], p["dc2_b"]).reshape(B, D)
    return out, z, mean, var, log_var


def _quantize_weights(p):
    """Round the weight matrices (not biases) through bf16, matching kernel storage."""
    return {k: (v.astype(jnp.bfloat16).astype(jnp.float32) if k.endswith("_w") else v)
            for k, v in p.items()}


# ----------------------------------------------------------------------------
if __name__ == "__main__":
    B = 2
    input_dim_x, latent_dim_x = 16, 4
    input_dim_y, latent_dim_y = 12, 3

    root = jax.random.PRNGKey(0)
    k_px, k_py, k_x, k_y, k_ex, k_ey = jax.random.split(root, 6)

    params_x = init_vae_params(k_px, input_dim_x, latent_dim_x)
    params_y = init_vae_params(k_py, input_dim_y, latent_dim_y)

    x = jax.random.normal(k_x, (B, input_dim_x), jnp.float32)
    y = jax.random.normal(k_y, (B, input_dim_y), jnp.float32)
    eps_x = jax.random.normal(k_ex, (B, latent_dim_x), jnp.float32)
    eps_y = jax.random.normal(k_ey, (B, latent_dim_y), jnp.float32)

    # Weight prep happens exactly once here (hoisted out of the jitted forward).
    model = CorVAEConvPallas(params_x, params_y, input_dim_x, input_dim_y,
                             latent_dim_x, latent_dim_y)

    outs = jax.block_until_ready(model(x, y, eps_x, eps_y))
    (ox, zx, mx, vx, lvx, oy, zy, my, vy, lvy) = outs

    # shape sanity
    assert ox.shape == (B, input_dim_x) and oy.shape == (B, input_dim_y)
    assert zx.shape == mx.shape == vx.shape == lvx.shape == (B, latent_dim_x)
    assert zy.shape == my.shape == vy.shape == lvy.shape == (B, latent_dim_y)

    # Numerics: (1) tight check against a reference using the same bf16-rounded
    # weights as the kernel (isolates band-matrix / block-diag / layout correctness);
    # (2) loose check against the full-f32 reference (bounds the intended bf16 error).
    with jax.default_matmul_precision("highest"):
        ref_q = (_ref_vae_forward(_quantize_weights(params_x), x, eps_x)
                 + _ref_vae_forward(_quantize_weights(params_y), y, eps_y))
        ref_f = (_ref_vae_forward(params_x, x, eps_x)
                 + _ref_vae_forward(params_y, y, eps_y))
    for got, want in zip(outs, ref_q):
        assert bool(jnp.allclose(got, want, atol=3e-2, rtol=3e-2))
    for got, want in zip(outs, ref_f):
        assert bool(jnp.allclose(got, want, atol=1e-1, rtol=1e-1))

    print("KERNEL_OK")
</pallas_src>

<mosaic_0001>
module attributes {stable_mosaic.version = 11 : i64} {
  func.func @kernel(%arg0: memref<2x28xf32, #tpu.memory_space<vmem>>, %arg1: memref<2x256xf32, #tpu.memory_space<vmem>>, %arg2: memref<28x224xbf16, #tpu.memory_space<vmem>>, %arg3: memref<224x448xbf16, #tpu.memory_space<vmem>>, %arg4: memref<448x512xbf16, #tpu.memory_space<vmem>>, %arg5: memref<256x448xbf16, #tpu.memory_space<vmem>>, %arg6: memref<448x224xbf16, #tpu.memory_space<vmem>>, %arg7: memref<224x256xbf16, #tpu.memory_space<vmem>>, %arg8: memref<1x2304xf32, #tpu.memory_space<vmem>>, %arg9: memref<2x1280xf32, #tpu.memory_space<vmem>>) attributes {dimension_semantics = [], scalar_prefetch = 0 : i64, scratch_operands = 0 : i64, tpu.core_type = #tpu.core_type<tc>} {
    %c0 = arith.constant 0 : index
    %c0_0 = arith.constant 0 : index
    %0 = vector.load %arg0[%c0, %c0_0] : memref<2x28xf32, #tpu.memory_space<vmem>>, vector<2x28xf32>
    %1 = arith.truncf %0 : vector<2x28xf32> to vector<2x28xbf16>
    %c0_1 = arith.constant 0 : index
    %c0_2 = arith.constant 0 : index
    %2 = vector.load %arg2[%c0_1, %c0_2] : memref<28x224xbf16, #tpu.memory_space<vmem>>, vector<28x224xbf16>
    %cst = arith.constant dense<0.000000e+00> : vector<2x224xf32>
    %3 = tpu.matmul %1, %2, %cst {dimension_numbers = #tpu.dot_dimension_numbers<[1], [0], [0], [1], [0, 0, 1, 1], [], []>} : vector<2x28xbf16>, vector<28x224xbf16>, vector<2x224xf32> -> vector<2x224xf32>
    %c0_3 = arith.constant 0 : index
    %c0_4 = arith.constant 0 : index
    %4 = vector.load %arg8[%c0_3, %c0_4] : memref<1x2304xf32, #tpu.memory_space<vmem>>, vector<1x224xf32>
    %5 = vector.broadcast %4 : vector<1x224xf32> to vector<2x224xf32>
    %6 = arith.addf %3, %5 : vector<2x224xf32>
    %cst_5 = arith.constant 0.000000e+00 : f32
    %7 = vector.broadcast %cst_5 : f32 to vector<2x224xf32>
    %8 = arith.maximumf %6, %7 : vector<2x224xf32>
    %9 = arith.truncf %8 : vector<2x224xf32> to vector<2x224xbf16>
    %c0_6 = arith.constant 0 : index
    %c0_7 = arith.constant 0 : index
    %10 = vector.load %arg3[%c0_6, %c0_7] : memref<224x448xbf16, #tpu.memory_space<vmem>>, vector<224x448xbf16>
    %cst_8 = arith.constant dense<0.000000e+00> : vector<2x448xf32>
    %11 = tpu.matmul %9, %10, %cst_8 {dimension_numbers = #tpu.dot_dimension_numbers<[1], [0], [0], [1], [0, 0, 1, 1], [], []>} : vector<2x224xbf16>, vector<224x448xbf16>, vector<2x448xf32> -> vector<2x448xf32>
    %c0_9 = arith.constant 0 : index
    %c256 = arith.constant 256 : index
    %12 = vector.load %arg8[%c0_9, %c256] : memref<1x2304xf32, #tpu.memory_space<vmem>>, vector<1x448xf32>
    %13 = vector.broadcast %12 : vector<1x448xf32> to vector<2x448xf32>
    %14 = arith.addf %11, %13 : vector<2x448xf32>
    %cst_10 = arith.constant 0.000000e+00 : f32
    %15 = vector.broadcast %cst_10 : f32 to vector<2x448xf32>
    %16 = arith.maximumf %14, %15 : vector<2x448xf32>
    %17 = arith.truncf %16 : vector<2x448xf32> to vector<2x448xbf16>
    %c0_11 = arith.constant 0 : index
    %c0_12 = arith.constant 0 : index
    %18 = vector.load %arg4[%c0_11, %c0_12] : memref<448x512xbf16, #tpu.memory_space<vmem>>, vector<448x512xbf16>
    %cst_13 = arith.constant dense<0.000000e+00> : vector<2x512xf32>
    %19 = tpu.matmul %17, %18, %cst_13 {dimension_numbers = #tpu.dot_dimension_numbers<[1], [0], [0], [1], [0, 0, 1, 1], [], []>} : vector<2x448xbf16>, vector<448x512xbf16>, vector<2x512xf32> -> vector<2x512xf32>
    %c0_14 = arith.constant 0 : index
    %c768 = arith.constant 768 : index
    %20 = vector.load %arg8[%c0_14, %c768] : memref<1x2304xf32, #tpu.memory_space<vmem>>, vector<1x512xf32>
    %21 = vector.broadcast %20 : vector<1x512xf32> to vector<2x512xf32>
    %22 = arith.addf %19, %21 : vector<2x512xf32>
    %23 = vector.extract_strided_slice %22 {offsets = [0, 0], sizes = [2, 256], strides = [1, 1]} : vector<2x512xf32> to vector<2x256xf32>
    %24 = vector.extract_strided_slice %22 {offsets = [0, 256], sizes = [2, 256], strides = [1, 1]} : vector<2x512xf32> to vector<2x256xf32>
    %cst_15 = arith.constant 5.000000e-01 : f32
    %25 = vector.broadcast %cst_15 : f32 to vector<2x256xf32>
    %26 = arith.mulf %25, %24 : vector<2x256xf32>
    %27 = math.exp %26 : vector<2x256xf32>
    %28 = arith.mulf %27, %27 : vector<2x256xf32>
    %c0_16 = arith.constant 0 : index
    %c0_17 = arith.constant 0 : index
    %29 = vector.load %arg1[%c0_16, %c0_17] : memref<2x256xf32, #tpu.memory_space<vmem>>, vector<2x256xf32>
    %30 = arith.mulf %27, %29 : vector<2x256xf32>
    %31 = arith.addf %23, %30 : vector<2x256xf32>
    %32 = arith.truncf %31 : vector<2x256xf32> to vector<2x256xbf16>
    %c0_18 = arith.constant 0 : index
    %c0_19 = arith.constant 0 : index
    %33 = vector.load %arg5[%c0_18, %c0_19] : memref<256x448xbf16, #tpu.memory_space<vmem>>, vector<256x448xbf16>
    %cst_20 = arith.constant dense<0.000000e+00> : vector<2x448xf32>
    %34 = tpu.matmul %32, %33, %cst_20 {dimension_numbers = #tpu.dot_dimension_numbers<[1], [0], [0], [1], [0, 0, 1, 1], [], []>} : vector<2x256xbf16>, vector<256x448xbf16>, vector<2x448xf32> -> vector<2x448xf32>
    %c0_21 = arith.constant 0 : index
    %c1280 = arith.constant 1280 : index
    %35 = vector.load %arg8[%c0_21, %c1280] : memref<1x2304xf32, #tpu.memory_space<vmem>>, vector<1x448xf32>
    %36 = vector.broadcast %35 : vector<1x448xf32> to vector<2x448xf32>
    %37 = arith.addf %34, %36 : vector<2x448xf32>
    %cst_22 = arith.constant 0.000000e+00 : f32
    %38 = vector.broadcast %cst_22 : f32 to vector<2x448xf32>
    %39 = arith.maximumf %37, %38 : vector<2x448xf32>
    %40 = arith.truncf %39 : vector<2x448xf32> to vector<2x448xbf16>
    %c0_23 = arith.constant 0 : index
    %c0_24 = arith.constant 0 : index
    %41 = vector.load %arg6[%c0_23, %c0_24] : memref<448x224xbf16, #tpu.memory_space<vmem>>, vector<448x224xbf16>
    %cst_25 = arith.constant dense<0.000000e+00> : vector<2x224xf32>
    %42 = tpu.matmul %40, %41, %cst_25 {dimension_numbers = #tpu.dot_dimension_numbers<[1], [0], [0], [1], [0, 0, 1, 1], [], []>} : vector<2x448xbf16>, vector<448x224xbf16>, vector<2x224xf32> -> vector<2x224xf32>
    %c0_26 = arith.constant 0 : index
    %c1792 = arith.constant 1792 : index
    %43 = vector.load %arg8[%c0_26, %c1792] : memref<1x2304xf32, #tpu.memory_space<vmem>>, vector<1x224xf32>
    %44 = vector.broadcast %43 : vector<1x224xf32> to vector<2x224xf32>
    %45 = arith.addf %42, %44 : vector<2x224xf32>
    %cst_27 = arith.constant 0.000000e+00 : f32
    %46 = vector.broadcast %cst_27 : f32 to vector<2x224xf32>
    %47 = arith.maximumf %45, %46 : vector<2x224xf32>
    %48 = arith.truncf %47 : vector<2x224xf32> to vector<2x224xbf16>
    %c0_28 = arith.constant 0 : index
    %c0_29 = arith.constant 0 : index
    %49 = vector.load %arg7[%c0_28, %c0_29] : memref<224x256xbf16, #tpu.memory_space<vmem>>, vector<224x256xbf16>
    %cst_30 = arith.constant dense<0.000000e+00> : vector<2x256xf32>
    %50 = tpu.matmul %48, %49, %cst_30 {dimension_numbers = #tpu.dot_dimension_numbers<[1], [0], [0], [1], [0, 0, 1, 1], [], []>} : vector<2x224xbf16>, vector<224x256xbf16>, vector<2x256xf32> -> vector<2x256xf32>
    %c0_31 = arith.constant 0 : index
    %c2048 = arith.constant 2048 : index
    %51 = vector.load %arg8[%c0_31, %c2048] : memref<1x2304xf32, #tpu.memory_space<vmem>>, vector<1x256xf32>
    %52 = vector.broadcast %51 : vector<1x256xf32> to vector<2x256xf32>
    %53 = arith.addf %50, %52 : vector<2x256xf32>
    %c0_32 = arith.constant 0 : index
    %c0_33 = arith.constant 0 : index
    %54 = vector.load %arg9[%c0_32, %c0_33] : memref<2x1280xf32, #tpu.memory_space<vmem>>, vector<2x256xf32>
    tpu.vector_store %arg9[%c0_32, %c0_33], %53 {strides = array<i32>} : memref<2x1280xf32, #tpu.memory_space<vmem>>, vector<2x256xf32>,
    %c0_34 = arith.constant 0 : index
    %c256_35 = arith.constant 256 : index
    %55 = vector.load %arg9[%c0_34, %c256_35] : memref<2x1280xf32, #tpu.memory_space<vmem>>, vector<2x256xf32>
    tpu.vector_store %arg9[%c0_34, %c256_35], %31 {strides = array<i32>} : memref<2x1280xf32, #tpu.memory_space<vmem>>, vector<2x256xf32>,
    %c0_36 = arith.constant 0 : index
    %c512 = arith.constant 512 : index
    %56 = vector.load %arg9[%c0_36, %c512] : memref<2x1280xf32, #tpu.memory_space<vmem>>, vector<2x256xf32>
    tpu.vector_store %arg9[%c0_36, %c512], %23 {strides = array<i32>} : memref<2x1280xf32, #tpu.memory_space<vmem>>, vector<2x256xf32>,
    %c0_37 = arith.constant 0 : index
    %c768_38 = arith.constant 768 : index
    %57 = vector.load %arg9[%c0_37, %c768_38] : memref<2x1280xf32, #tpu.memory_space<vmem>>, vector<2x256xf32>
    tpu.vector_store %arg9[%c0_37, %c768_38], %28 {strides = array<i32>} : memref<2x1280xf32, #tpu.memory_space<vmem>>, vector<2x256xf32>,
    %c0_39 = arith.constant 0 : index
    %c1024 = arith.constant 1024 : index
    %58 = vector.load %arg9[%c0_39, %c1024] : memref<2x1280xf32, #tpu.memory_space<vmem>>, vector<2x256xf32>
    tpu.vector_store %arg9[%c0_39, %c1024], %24 {strides = array<i32>} : memref<2x1280xf32, #tpu.memory_space<vmem>>, vector<2x256xf32>,
    return
  }
}

</mosaic_0001>

<bundles_post_ra>
// kernel: _forward.1
= control target key start
LH: loop header
LB: loop body
LE: loop exit
PB: predicated region body
PF: predicated region fallthrough
CT: control target
= control target key end

     0   :  { %14 = vsyncpa [#allocation3], 0  ;;  %s3911_s0 = inlined_call_operand.vmem [shape: f32[2,28], index: 0, kind: input, shape index: {}]   ;;  %s3912_s1 = inlined_call_operand.vmem [shape: f32[2,256], index: 1, kind: input, shape index: {}]   ;;  %s3913_s2 = inlined_call_operand.hbm [shape: bf16[28,224], index: 2, kind: input, shape index: {}]   ;;  %s3914_s3 = inlined_call_operand.hbm [shape: bf16[224,448], index: 3, kind: input, shape index: {}]   ;;  %s3915_s4 = inlined_call_operand.hbm [shape: bf16[448,512], index: 4, kind: input, shape index: {}]   ;;  %s3916_s5 = inlined_call_operand.hbm [shape: bf16[256,448], index: 5, kind: input, shape index: {}]   ;;  %s3917_s6 = inlined_call_operand.hbm [shape: bf16[448,224], index: 6, kind: input, shape index: {}]   ;;  %s3918_s7 = inlined_call_operand.hbm [shape: bf16[224,256], index: 7, kind: input, shape index: {}]   ;;  %s3919_s8 = inlined_call_operand.vmem [shape: f32[1,2304], index: 8, kind: input, shape index: {}]   ;;  %s3920_s9 = inlined_call_operand.vmem [shape: f32[2,1280], index: 9, kind: output, shape index: {}]  }
   0x1   :  { %15 = vsyncpa [#allocation5], 0 }
   0x2   :  { %16 = vsyncpa [#allocation8], 0 }
   0x3   :  { %17 = vsyncpa [#allocation11], 0  ;;  %s3729_s30 = smov [#allocation4]  }
   0x4   :  { %s39_s10 = sshll.u32 %s3729_s30, 4  ;;  %s40_s10 = int_to_ptr.vmem [resolvable:$true] %s39_s10 }
   0x5   :  { %s3609_s11 = scalar_lea.vmem %s40_s10, 7168  ;;  %p3614_p1 = scmp.lt.s32.totalorder %s40_s10, %s40_s10 }
   0x6   :  { %p3610_p0 = scmp.ne.s32.totalorder %s40_s10, %s3609_s11  ;;  %p3615_p2 = scmp.lt.s32.totalorder %s3609_s11, %s3609_s11 }
   0x8   :  { %p3616_p3 = por %p3615_p2, %p3614_p1 }
   0xa   :  { %p3617_p4 = pnand %p3616_p3, %p3610_p0 }
   0xc   :  { %3620 = shalt.err (!%p3617_p4)
}
   0xd   :  { %s3730_s12 = smov 256   ;;  %s3731_s13 = smov 16  }
   0xe   :  { %45 = dma.hbm_to_vmem [thread:$0]  %s3914_s3, 7168, %s40_s10, [#allocation5], %s3730_s12, %s3730_s12, %s3731_s13  }
   0xf   :  { %s3732_s16 = smov [#allocation7]   ;;  %s3733_s18 = smov [#allocation2]  }
  0x10   :  { %s63_s17 = sshll.u32 %s3732_s16, 4  ;;  %s27_s19 = sshll.u32 %s3733_s18, 4  ;;  %s64_s17 = int_to_ptr.vmem [resolvable:$true] %s63_s17  ;;  %s28_s19 = int_to_ptr.vmem [resolvable:$true] %s27_s19 }
  0x11   :  { %s3629_s20 = scalar_lea.vmem %s64_s17, 8192  ;;  %p3634_p6 = scmp.lt.s32.totalorder %s64_s17, %s64_s17 }
  0x12   :  { %p3630_p5 = scmp.ne.s32.totalorder %s64_s17, %s3629_s20  ;;  %p3635_p7 = scmp.lt.s32.totalorder %s3629_s20, %s3629_s20 }
  0x14   :  { %p3636_p8 = por %p3635_p7, %p3634_p6 }
  0x16   :  { %p3637_p9 = pnand %p3636_p8, %p3630_p5 }
  0x18   :  { %3640 = shalt.err (!%p3637_p9)
}
  0x19   :  { %69 = dma.hbm_to_vmem [thread:$0]  %s3916_s5, 8192, %s64_s17, [#allocation8], %s3730_s12, %s3730_s12, %s3731_s13  }
  0x1a   :  { %s3649_s3 = scalar_lea.vmem %s28_s19, 512  ;;  %p3654_p11 = scmp.lt.s32.totalorder %s28_s19, %s28_s19 }
  0x1b   :  { %p3650_p10 = scmp.ne.s32.totalorder %s28_s19, %s3649_s3  ;;  %p3655_p12 = scmp.lt.s32.totalorder %s3649_s3, %s3649_s3 }
  0x1d   :  { %p3656_p13 = por %p3655_p12, %p3654_p11 }
  0x1f   :  { %p3657_p0 = pnand %p3656_p13, %p3650_p10 }
  0x21   :  { %3660 = shalt.err (!%p3657_p0)
}
  0x22   :  { %s3734_s23 = smov 128   ;;  %s3735_s24 = smov 8  }
  0x23   :  { %33 = dma.hbm_to_vmem [thread:$0]  %s3913_s2, 512, %s28_s19, [#allocation3], %s3734_s23, %s3734_s23, %s3735_s24  }
  0x24   :  { %s3736_s27 = smov [#allocation6]   ;;  %s3737_s5 = smov [#allocation9]  }
  0x25   :  { %s51_s28 = sshll.u32 %s3736_s27, 4  ;;  %s75_s29 = sshll.u32 %s3737_s5, 4  ;;  %s52_s28 = int_to_ptr.vmem [resolvable:$true] %s51_s28  ;;  %s76_s29 = int_to_ptr.vmem [resolvable:$true] %s75_s29 }
  0x26   :  { %s3669_s30 = scalar_lea.vmem %s52_s28, 14336  ;;  %p3674_p2 = scmp.lt.s32.totalorder %s52_s28, %s52_s28 }
  0x27   :  { %p3670_p1 = scmp.ne.s32.totalorder %s52_s28, %s3669_s30  ;;  %p3675_p3 = scmp.lt.s32.totalorder %s3669_s30, %s3669_s30 }
  0x29   :  { %p3676_p4 = por %p3675_p3, %p3674_p2 }
  0x2b   :  { %p3677_p5 = pnand %p3676_p4, %p3670_p1 }
  0x2d   :  { %3680 = shalt.err (!%p3677_p5)
}
  0x2e   :  { %57 = dma.hbm_to_vmem [thread:$0]  %s3915_s4, 14336, %s52_s28, [#allocation5], %s3730_s12, %s3730_s12, %s3731_s13  }
  0x2f   :  { %s3689_s2 = scalar_lea.vmem %s76_s29, 7168  ;;  %p3694_p7 = scmp.lt.s32.totalorder %s76_s29, %s76_s29 }
  0x30   :  { %p3690_p6 = scmp.ne.s32.totalorder %s76_s29, %s3689_s2  ;;  %p3695_p8 = scmp.lt.s32.totalorder %s3689_s2, %s3689_s2 }
  0x32   :  { %p3696_p9 = por %p3695_p8, %p3694_p7 }
  0x34   :  { %p3697_p10 = pnand %p3696_p9, %p3690_p6 }
  0x36   :  { %3700 = shalt.err (!%p3697_p10)
}
  0x37   :  { %81 = dma.hbm_to_vmem [thread:$0]  %s3917_s6, 7168, %s76_s29, [#allocation8], %s3734_s23, %s3734_s23, %s3735_s24  }
  0x38   :  { %s3738_s16 = smov [#allocation10]  }
  0x39   :  { %s87_s17 = sshll.u32 %s3738_s16, 4  ;;  %s88_s17 = int_to_ptr.vmem [resolvable:$true] %s87_s17 }
  0x3a   :  { %s3709_s18 = scalar_lea.vmem %s88_s17, 3584  ;;  %p3714_p12 = scmp.lt.s32.totalorder %s88_s17, %s88_s17 }
  0x3b   :  { %p3710_p11 = scmp.ne.s32.totalorder %s88_s17, %s3709_s18  ;;  %p3715_p13 = scmp.lt.s32.totalorder %s3709_s18, %s3709_s18 }
  0x3d   :  { %p3716_p0 = por %p3715_p13, %p3714_p12 }
  0x3f   :  { %p3717_p1 = pnand %p3716_p0, %p3710_p11 }
  0x41   :  { %3720 = shalt.err (!%p3717_p1)
}
  0x42   :  { %93 = dma.hbm_to_vmem [thread:$0]  %s3918_s7, 3584, %s88_s17, [#allocation11], %s3734_s23, %s3734_s23, %s3735_s24  }
  0x43   :  { %3721 = dma.done.wait [#allocation3], 512  }
  0x44   :  { %3722 = vsyncadd [#allocation3], 4294966784 }
  0x45   :  { %3723 = dma.done.wait [#allocation5], 21504  }
  0x46   :  { %3724 = vsyncadd [#allocation5], 4294945792 }
  0x47   :  { %3725 = dma.done.wait [#allocation8], 15360  }
  0x48   :  { %3726 = vsyncadd [#allocation8], 4294951936 }
  0x49   :  { %3727 = dma.done.wait [#allocation11], 3584  }
  0x4a   :  { %3728 = vsyncadd [#allocation11], 4294963712  ;;  %v3739_v0 = vmov 0   ;;  %vm155_vm0 = vcmask 1045504   ;;  %v3120_v3 = vld [vmem:[#allocation2 + $0x4] ss:$8 sps:$4 sm:$0xff]  }
  0x4b   :  { %194 = vmatprep.mubr.bf16.mxu1 %v3739_v0  ;;  %v3117_v1 = vld [vmem:[#allocation2 + $0x14] ss:$8 sps:$4 sm:$0x3f]   ;;  %v3119_v2 = vld [vmem:[#allocation2 + $0x10] ss:$8 sps:$4 sm:$0x3f]  }
  0x4c   :  { %2776 = vmatprep.subr.msk.bf16.mxu1 %vm155_vm0, %v3117_v1  ;;  %v3122_v4 = vld [vmem:[#allocation2] ss:$8 sps:$4 sm:$0xff]   ;;  %v157_v5 = vsel %vm155_vm0, %v3119_v2, 0  ;;  %v3125_v7 = vld [vmem:[#allocation4 + $0xe4] ss:$16 sps:$4 sm:$0xff]   ;;  %vm151_vm1 = vcmask 228352   ;;  %v123_v2 = vlaneseq }
  0x4d   :  { %v115_v6 = vld [vmem:[%s3911_s0] sm:$0x3]  ;;  %175 = vmatpush1.bf16.msra.mxu1 %v157_v5  ;;  %v3126_v8 = vld [vmem:[#allocation4 + $0xec] ss:$16 sps:$4 sm:$0xff]   ;;  %v3128_v9 = vld [vmem:[#allocation4 + $0xe8] ss:$16 sps:$4 sm:$0xff]  }
  0x4e   :  { %176 = vmatprep.subr.bf16.mxu1 %v3120_v3  ;;  %v3123_v10 = vld [vmem:[#allocation4 + $0xe0] ss:$16 sps:$4 sm:$0xff]   ;;  %v116_v11 = vpack.c.bf16 %v115_v6, %v115_v6  ;;  %610 = vmatprep.subr.bf16.mxu0 %v3126_v8  ;;  %v3132_v12 = vld [vmem:[#allocation4 + $0xcc] ss:$16 sps:$4 sm:$0xff]   ;;  %v3134_v13 = vld [vmem:[#allocation4 + $0xc8] ss:$16 sps:$4 sm:$0xff]  }
  0x4f   :  { %611 = vmatpush1.bf16.msra.mxu0 %v3128_v9  ;;  %v3131_v14 = vld [vmem:[#allocation4 + $0xc4] ss:$16 sps:$4 sm:$0xff]   ;;  %v3138_v15 = vld [vmem:[#allocation4 + $0xac] ss:$16 sps:$4 sm:$0xff]   ;;  %v3129_v16 = vld [vmem:[#allocation4 + $0xc0] ss:$16 sps:$4 sm:$0xff]  }
  0x50   :  { %612 = vmatprep.subr.bf16.mxu0 %v3132_v12  ;;  %v3140_v17 = vld [vmem:[#allocation4 + $0xa8] ss:$16 sps:$4 sm:$0xff]   ;;  %v3137_v18 = vld [vmem:[#allocation4 + $0xa4] ss:$16 sps:$4 sm:$0xff]   ;;  %v3144_v19 = vld [vmem:[#allocation4 + $0x8c] ss:$16 sps:$4 sm:$0xff]  }
  0x51   :  { %177 = vmatpush1.bf16.msra.mxu1 %v3122_v4  ;;  %v3135_v20 = vld [vmem:[#allocation4 + $0xa0] ss:$16 sps:$4 sm:$0xff]   ;;  %v3146_v21 = vld [vmem:[#allocation4 + $0x88] ss:$16 sps:$4 sm:$0xff]   ;;  %v3143_v22 = vld [vmem:[#allocation4 + $0x84] ss:$16 sps:$4 sm:$0xff]  }
  0x52   :  { %569 = vmatprep.subr.bf16.mxu1 %v3125_v7  ;;  %v3150_v23 = vld [vmem:[#allocation4 + $0x6c] ss:$16 sps:$4 sm:$0xff]   ;;  %v3141_v24 = vld [vmem:[#allocation4 + $0x80] ss:$16 sps:$4 sm:$0xff]   ;;  %v3152_v25 = vld [vmem:[#allocation4 + $0x68] ss:$16 sps:$4 sm:$0xff]  }
  0x53   :  { %613 = vmatpush1.bf16.msra.mxu0 %v3134_v13  ;;  %v3149_v26 = vld [vmem:[#allocation4 + $0x64] ss:$16 sps:$4 sm:$0xff]   ;;  %v3156_v27 = vld [vmem:[#allocation4 + $0x4c] ss:$16 sps:$4 sm:$0xff]   ;;  %v3147_v28 = vld [vmem:[#allocation4 + $0x60] ss:$16 sps:$4 sm:$0xff]  }
  0x54   :  { %2777 = vmatmul.mubr.msk.bf16.vlgmr.msra.gmra.mxu1 %vm151_vm1, %v116_v11  ;;  %614 = vmatprep.subr.bf16.mxu0 %v3138_v15  ;;  %v3158_v29 = vld [vmem:[#allocation4 + $0x48] ss:$16 sps:$4 sm:$0xff]   ;;  %v3155_v30 = vld [vmem:[#allocation4 + $0x44] ss:$16 sps:$4 sm:$0xff]   ;;  %v3162_v31 = vld [vmem:[#allocation4 + $0x2c] ss:$16 sps:$4 sm:$0xff]  }
  0x55   :  { %570 = vmatpush1.bf16.msra.mxu1 %v3123_v10  ;;  %v3153_v32 = vld [vmem:[#allocation4 + $0x40] ss:$16 sps:$4 sm:$0xff]   ;;  %v3164_v33 = vld [vmem:[#allocation4 + $0x28] ss:$16 sps:$4 sm:$0xff]   ;;  %v3161_v34 = vld [vmem:[#allocation4 + $0x24] ss:$16 sps:$4 sm:$0xff]  }
  0x56   :  { %571 = vmatprep.subr.bf16.mxu1 %v3131_v14  ;;  %v3168_v35 = vld [vmem:[#allocation4 + $0xc] ss:$16 sps:$4 sm:$0xff]   ;;  %v3159_v36 = vld [vmem:[#allocation4 + $0x20] ss:$16 sps:$4 sm:$0xff]   ;;  %v3170_v37 = vld [vmem:[#allocation4 + $0x8] ss:$16 sps:$4 sm:$0xff]  }
  0x57   :  { %615 = vmatpush1.bf16.msra.mxu0 %v3140_v17  ;;  %v3167_v38 = vld [vmem:[#allocation4 + $0x4] ss:$16 sps:$4 sm:$0xff]   ;;  %v3174_v39 = vld [vmem:[#allocation4 + $0x1ac] ss:$16 sps:$4 sm:$0xff]   ;;  %v3165_v40 = vld [vmem:[#allocation4] ss:$16 sps:$4 sm:$0xff]  }
  0x58   :  { %616 = vmatprep.subr.bf16.mxu0 %v3144_v19  ;;  %v3176_v41 = vld [vmem:[#allocation4 + $0x1a8] ss:$16 sps:$4 sm:$0xff]   ;;  %v3173_v42 = vld [vmem:[#allocation4 + $0x1a4] ss:$16 sps:$4 sm:$0xff]   ;;  %v3180_v43 = vld [vmem:[#allocation4 + $0x18c] ss:$16 sps:$4 sm:$0xff]  }
  0x59   :  { %572 = vmatpush1.bf16.msra.mxu1 %v3129_v16  ;;  %v3171_v44 = vld [vmem:[#allocation4 + $0x1a0] ss:$16 sps:$4 sm:$0xff]   ;;  %v3182_v45 = vld [vmem:[#allocation4 + $0x188] ss:$16 sps:$4 sm:$0xff]   ;;  %v3179_v46 = vld [vmem:[#allocation4 + $0x184] ss:$16 sps:$4 sm:$0xff]  }
  0x5a   :  { %573 = vmatprep.subr.bf16.mxu1 %v3137_v18  ;;  %v3186_v47 = vld [vmem:[#allocation4 + $0x16c] ss:$16 sps:$4 sm:$0xff]   ;;  %v3177_v48 = vld [vmem:[#allocation4 + $0x180] ss:$16 sps:$4 sm:$0xff]   ;;  %v3188_v49 = vld [vmem:[#allocation4 + $0x168] ss:$16 sps:$4 sm:$0xff]  }
  0x5b   :  { %617 = vmatpush1.bf16.msra.mxu0 %v3146_v21  ;;  %v3185_v50 = vld [vmem:[#allocation4 + $0x164] ss:$16 sps:$4 sm:$0xff]   ;;  %v3192_v51 = vld [vmem:[#allocation4 + $0x14c] ss:$16 sps:$4 sm:$0xff]   ;;  %v3183_v52 = vld [vmem:[#allocation4 + $0x160] ss:$16 sps:$4 sm:$0xff]  }
  0x5c   :  { %618 = vmatprep.subr.bf16.mxu0 %v3150_v23  ;;  %v3194_v53 = vld [vmem:[#allocation4 + $0x148] ss:$16 sps:$4 sm:$0xff]   ;;  %v3191_v54 = vld [vmem:[#allocation4 + $0x144] ss:$16 sps:$4 sm:$0xff]   ;;  %v3189_v55 = vld [vmem:[#allocation4 + $0x140] ss:$16 sps:$4 sm:$0xff]  }
  0x5d   :  { %574 = vmatpush1.bf16.msra.mxu1 %v3135_v20  ;;  %v3197_v56 = vld [vmem:[#allocation4 + $0x124] ss:$16 sps:$4 sm:$0xff]   ;;  %v3198_v57 = vld [vmem:[#allocation4 + $0x12c] ss:$16 sps:$4 sm:$0xff]   ;;  %v3195_v58 = vld [vmem:[#allocation4 + $0x120] ss:$16 sps:$4 sm:$0xff]  }
  0x5e   :  { %575 = vmatprep.subr.bf16.mxu1 %v3143_v22  ;;  %v3200_v59 = vld [vmem:[#allocation4 + $0x128] ss:$16 sps:$4 sm:$0xff]   ;;  %v3203_v60 = vld [vmem:[#allocation4 + $0x104] ss:$16 sps:$4 sm:$0xff]   ;;  %v3204_v61 = vld [vmem:[#allocation4 + $0x10c] ss:$16 sps:$4 sm:$0xff]  }
  0x5f   :  { %619 = vmatpush1.bf16.msra.mxu0 %v3152_v25  ;;  %v3201_v62 = vld [vmem:[#allocation4 + $0x100] ss:$16 sps:$4 sm:$0xff]   ;;  %v3206_v63 = vld [vmem:[#allocation4 + $0x108] ss:$16 sps:$4 sm:$0xff]   ;;  %v3209_v0 = vld [vmem:[#allocation6 + $0xe4] ss:$16 sps:$4 sm:$0xff]  }
  0x60   :  { %620 = vmatprep.subr.bf16.mxu0 %v3156_v27  ;;  %v3224_v1 = vld [vmem:[#allocation6 + $0x2e4] ss:$16 sps:$4 sm:$0xff]   ;;  %v3829_v3 = vshrl.u32 %v123_v2, 7  ;;  %v121_v5 = vld [vmem:[%s3919_s8] sm:$0x3]  ;;  %vm565_vm2 = vcmask 785408  }
  0x61   :  { %576 = vmatpush1.bf16.msra.mxu1 %v3141_v24  ;;  %v3207_v18 = vld [vmem:[#allocation6 + $0xe0] ss:$16 sps:$4 sm:$0xff]   ;;  %v3212_v21 = vld [vmem:[#allocation6 + $0xc4] ss:$16 sps:$4 sm:$0xff]   ;;  %vm1353_vm3 = vcmask 523264  }
  0x62   :  { %577 = vmatprep.subr.bf16.mxu1 %v3149_v26  ;;  %v3832_v4 = vsub.s32 0, %v3829_v3  ;;  %v3838_v6 = vsub.s32 1, %v3829_v3  ;;  %v3222_v19 = vld [vmem:[#allocation6 + $0x2e0] ss:$16 sps:$4 sm:$0xff]   ;;  %v3230_v22 = vld [vmem:[#allocation6 + $0x2c4] ss:$16 sps:$4 sm:$0xff]  }
  0x63   :  { %621 = vmatpush1.bf16.msra.mxu0 %v3158_v29  ;;  %v3210_v23 = vld [vmem:[#allocation6 + $0xc0] ss:$16 sps:$4 sm:$0xff]   ;;  %v3215_v25 = vld [vmem:[#allocation6 + $0xa4] ss:$16 sps:$4 sm:$0xff]  }
  0x64   :  { %622 = vmatprep.subr.bf16.mxu0 %v3162_v31  ;;  %v126_v7 = vrot.slane %v121_v5, %v3832_v4  ;;  %v130_v8 = vrot.slane %v121_v5, %v3838_v6  ;;  %v3228_v24 = vld [vmem:[#allocation6 + $0x2c0] ss:$16 sps:$4 sm:$0xff]   ;;  %v3236_v26 = vld [vmem:[#allocation6 + $0x2a4] ss:$16 sps:$4 sm:$0xff]  }
  0x65   :  { %578 = vmatpush1.bf16.msra.mxu1 %v3147_v28  ;;  %v3213_v27 = vld [vmem:[#allocation6 + $0xa0] ss:$16 sps:$4 sm:$0xff]   ;;  %v3218_v29 = vld [vmem:[#allocation6 + $0x84] ss:$16 sps:$4 sm:$0xff]  }
  0x66   :  { %579 = vmatprep.subr.bf16.mxu1 %v3155_v30  ;;  %v3234_v28 = vld [vmem:[#allocation6 + $0x2a0] ss:$16 sps:$4 sm:$0xff]   ;;  %v3242_v30 = vld [vmem:[#allocation6 + $0x284] ss:$16 sps:$4 sm:$0xff]  }
  0x67   :  { %623 = vmatpush1.bf16.msra.mxu0 %v3164_v33  ;;  %v3216_v31 = vld [vmem:[#allocation6 + $0x80] ss:$16 sps:$4 sm:$0xff]   ;;  %v3221_v33 = vld [vmem:[#allocation6 + $0x64] ss:$16 sps:$4 sm:$0xff]  }
  0x68   :  { %624 = vmatprep.subr.bf16.mxu0 %v3168_v35  ;;  %v3219_v35 = vld [vmem:[#allocation6 + $0x60] ss:$16 sps:$4 sm:$0xff]   ;;  %v3284_v2 = vld [vmem:[#allocation6 + $0x324] ss:$16 sps:$4 sm:$0xff]  }
  0x69   :  { %580 = vmatpush1.bf16.msra.mxu1 %v3153_v32  ;;  %v3240_v32 = vld [vmem:[#allocation6 + $0x280] ss:$16 sps:$4 sm:$0xff]  }
  0x6a   :  { %581 = vmatprep.subr.bf16.mxu1 %v3161_v34  ;;  %v3248_v34 = vld [vmem:[#allocation6 + $0x264] ss:$16 sps:$4 sm:$0xff]   ;;  %v3279_v5 = vld [vmem:[#allocation6 + $0x120] ss:$16 sps:$4 sm:$0xff]  }
  0x6b   :  { %625 = vmatpush1.bf16.msra.mxu0 %v3170_v37  ;;  %v3227_v37 = vld [vmem:[#allocation6 + $0x44] ss:$16 sps:$4 sm:$0xff]  }
  0x6c   :  { %630 = vmatprep.subr.bf16.mxu0 %v3174_v39  ;;  %v3225_v39 = vld [vmem:[#allocation6 + $0x40] ss:$16 sps:$4 sm:$0xff]  }
  0x6d   :  { %582 = vmatpush1.bf16.msra.mxu1 %v3159_v36  ;;  %v3246_v36 = vld [vmem:[#allocation6 + $0x260] ss:$16 sps:$4 sm:$0xff]  }
  0x6e   :  { %583 = vmatprep.subr.bf16.mxu1 %v3167_v38  ;;  %v3254_v38 = vld [vmem:[#allocation6 + $0x244] ss:$16 sps:$4 sm:$0xff]  }
  0x6f   :  { %631 = vmatpush2.bf16.msra.mxu0 %v3176_v41  ;;  %v3233_v41 = vld [vmem:[#allocation6 + $0x24] ss:$16 sps:$4 sm:$0xff]  }
  0x70   :  { %632 = vmatprep.subr.bf16.mxu0 %v3180_v43  ;;  %v3231_v43 = vld [vmem:[#allocation6 + $0x20] ss:$16 sps:$4 sm:$0xff]  }
  0x71   :  { %584 = vmatpush1.bf16.msra.mxu1 %v3165_v40  ;;  %v3252_v40 = vld [vmem:[#allocation6 + $0x240] ss:$16 sps:$4 sm:$0xff]  }
  0x72   :  { %589 = vmatprep.subr.bf16.mxu1 %v3173_v42  ;;  %v3260_v42 = vld [vmem:[#allocation6 + $0x224] ss:$16 sps:$4 sm:$0xff]  }
  0x73   :  { %633 = vmatpush2.bf16.msra.mxu0 %v3182_v45  ;;  %v3239_v45 = vld [vmem:[#allocation6 + $0x4] ss:$16 sps:$4 sm:$0xff]  }
  0x74   :  { %634 = vmatprep.subr.bf16.mxu0 %v3186_v47  ;;  %v3237_v47 = vld [vmem:[#allocation6] ss:$16 sps:$4 sm:$0xff]  }
  0x75   :  { %590 = vmatpush2.bf16.msra.mxu1 %v3171_v44  ;;  %v3258_v44 = vld [vmem:[#allocation6 + $0x220] ss:$16 sps:$4 sm:$0xff]  }
  0x76   :  { %591 = vmatprep.subr.bf16.mxu1 %v3179_v46  ;;  %v3266_v46 = vld [vmem:[#allocation6 + $0x204] ss:$16 sps:$4 sm:$0xff]  }
  0x77   :  { %635 = vmatpush2.bf16.msra.mxu0 %v3188_v49  ;;  %v3245_v49 = vld [vmem:[#allocation6 + $0x1e4] ss:$16 sps:$4 sm:$0xff]  }
  0x78   :  { %636 = vmatprep.subr.bf16.mxu0 %v3192_v51  ;;  %v3243_v51 = vld [vmem:[#allocation6 + $0x1e0] ss:$16 sps:$4 sm:$0xff]  }
  0x79   :  { %592 = vmatpush2.bf16.msra.mxu1 %v3177_v48  ;;  %v3264_v48 = vld [vmem:[#allocation6 + $0x200] ss:$16 sps:$4 sm:$0xff]  }
  0x7a   :  { %593 = vmatprep.subr.bf16.mxu1 %v3185_v50  ;;  %v3272_v50 = vld [vmem:[#allocation6 + $0x364] ss:$16 sps:$4 sm:$0xff]  }
  0x7b   :  { %637 = vmatpush2.bf16.msra.mxu0 %v3194_v53  ;;  %v3251_v53 = vld [vmem:[#allocation6 + $0x1c4] ss:$16 sps:$4 sm:$0xff]  }
  0x7c   :  { %638 = vmatprep.subr.bf16.mxu0 %v3198_v57  ;;  %v3257_v57 = vld [vmem:[#allocation6 + $0x1a4] ss:$16 sps:$4 sm:$0xff]  }
  0x7d   :  { %594 = vmatpush2.bf16.msra.mxu1 %v3183_v52  ;;  %v3270_v52 = vld [vmem:[#allocation6 + $0x360] ss:$16 sps:$4 sm:$0xff]  }
  0x7e   :  { %595 = vmatprep.subr.bf16.mxu1 %v3191_v54  ;;  %v3278_v54 = vld [vmem:[#allocation6 + $0x344] ss:$16 sps:$4 sm:$0xff]  }
  0x7f   :  { %639 = vmatpush2.bf16.msra.mxu0 %v3200_v59  ;;  %v3263_v59 = vld [vmem:[#allocation6 + $0x184] ss:$16 sps:$4 sm:$0xff]  }
  0x80   :  { %640 = vmatprep.subr.bf16.mxu0 %v3204_v61  ;;  %v3269_v61 = vld [vmem:[#allocation6 + $0x164] ss:$16 sps:$4 sm:$0xff]  }
  0x81   :  { %596 = vmatpush2.bf16.msra.mxu1 %v3189_v55  ;;  %v3249_v55 = vld [vmem:[#allocation6 + $0x1c0] ss:$16 sps:$4 sm:$0xff]  }
  0x82   :  { %597 = vmatprep.subr.bf16.mxu1 %v3197_v56  ;;  %v3276_v56 = vld [vmem:[#allocation6 + $0x340] ss:$16 sps:$4 sm:$0xff]  }
  0x83   :  { %641 = vmatpush2.bf16.msra.mxu0 %v3206_v63  ;;  %v3275_v63 = vld [vmem:[#allocation6 + $0x144] ss:$16 sps:$4 sm:$0xff]  }
  0x84   :  { %1398 = vmatprep.subr.bf16.mxu0 %v3224_v1  ;;  %v3281_v1 = vld [vmem:[#allocation6 + $0x124] ss:$16 sps:$4 sm:$0xff]  }
  0x85   :  { %598 = vmatpush2.bf16.msra.mxu1 %v3195_v58  ;;  %v3255_v58 = vld [vmem:[#allocation6 + $0x1a0] ss:$16 sps:$4 sm:$0xff]  }
  0x86   :  { %599 = vmatprep.subr.bf16.mxu1 %v3203_v60  ;;  %v3261_v60 = vld [vmem:[#allocation6 + $0x180] ss:$16 sps:$4 sm:$0xff]  }
  0x89   :  { %600 = vmatpush2.bf16.msra.mxu1 %v3201_v62  ;;  %v3267_v62 = vld [vmem:[#allocation6 + $0x160] ss:$16 sps:$4 sm:$0xff]  }
  0x8a   :  { %1357 = vmatprep.subr.bf16.mxu1 %v3209_v0  ;;  %v3273_v0 = vld [vmem:[#allocation6 + $0x140] ss:$16 sps:$4 sm:$0xff]  }
 0x114   :  { %v196_v9 = vpop.f32.mrf.mxu1 }
 0x115   :  { %v197_v10 = vadd.f32 %v196_v9, %v126_v7  ;;  %v3282_v7 = vld [vmem:[#allocation6 + $0x320] ss:$16 sps:$4 sm:$0xff]   ;;  %v3290_v9 = vld [vmem:[#allocation6 + $0x304] ss:$16 sps:$4 sm:$0xff]  }
 0x116   :  { %v198_v11 = vpop.f32.mrf.mxu1 }
 0x117   :  { %v199_v12 = vadd.f32 %v198_v11, %v130_v8  ;;  %v203_v13 = vmax.f32 %v197_v10, 0.0  ;;  %v3287_v8 = vld [vmem:[#allocation6 + $0x104] ss:$16 sps:$4 sm:$0xff]   ;;  %v3285_v10 = vld [vmem:[#allocation6 + $0x100] ss:$16 sps:$4 sm:$0xff]  }
 0x118   :  { %v200_v14 = vpop.f32.mrf.mxu1  ;;  %v3288_v11 = vld [vmem:[#allocation6 + $0x300] ss:$16 sps:$4 sm:$0xff]  }
 0x119   :  { %v204_v15 = vmax.f32 %v199_v12, 0.0  ;;  %v205_v20 = vpack.c.bf16 %v203_v13, %v203_v13  ;;  %v3293_v12 = vld [vmem:[#allocation6 + $0xec] ss:$16 sps:$4 sm:$0xff]   ;;  %v3845_v14 = vsub.s32 2, %v3829_v3 }
 0x11a   :  { %v201_v16 = vpop.f32.mrf.mxu1  ;;  %v3296_v13 = vld [vmem:[#allocation6 + $0x2ec] ss:$16 sps:$4 sm:$0xff]  }
 0x11b   :  { %v206_v17 = vpack.c.bf16 %v204_v15, %v204_v15  ;;  %v263_v15 = vld [vmem:[%s3919_s8 + $0x2] sm:$0xf]  ;;  %v3851_v16 = vsub.s32 3, %v3829_v3 }
 0x11d   :  { %2834 = vmatprep.mubr.msk.bf16.mxu1 %vm565_vm2, %v206_v17  ;;  %2835 = vmatprep.mubr.msk.bf16.mxu0 %vm565_vm2, %v206_v17  ;;  %v268_v17 = vrot.slane %v263_v15, %v3832_v4 }
 0x11e   :  { %602 = vmatmul.mubr.bf16.vlgmr.msra.gmra.mxu1 %v205_v20  ;;  %643 = vmatmul.mubr.bf16.vlgmr.msra.gmra.mxu0 %v205_v20  ;;  %v280_v20 = vrot.slane %v263_v15, %v3851_v16 }
 0x11f   :  { %1358 = vmatpush1.bf16.msra.mxu1 %v3207_v18  ;;  %1399 = vmatpush1.bf16.msra.mxu0 %v3222_v19  ;;  %v276_v18 = vrot.slane %v263_v15, %v3845_v14  ;;  %v272_v19 = vrot.slane %v263_v15, %v3838_v6  ;;  %v3350_v15 = vld [vmem:[#allocation6 + $0x34c] ss:$16 sps:$4 sm:$0xff]  }
 0x120   :  { %1359 = vmatprep.subr.bf16.mxu1 %v3212_v21  ;;  %1400 = vmatprep.subr.bf16.mxu0 %v3230_v22 }
 0x123   :  { %1360 = vmatpush1.bf16.msra.mxu1 %v3210_v23  ;;  %1401 = vmatpush1.bf16.msra.mxu0 %v3228_v24 }
 0x124   :  { %1361 = vmatprep.subr.bf16.mxu1 %v3215_v25  ;;  %1402 = vmatprep.subr.bf16.mxu0 %v3236_v26 }
 0x127   :  { %1362 = vmatpush1.bf16.msra.mxu1 %v3213_v27  ;;  %1403 = vmatpush1.bf16.msra.mxu0 %v3234_v28 }
 0x128   :  { %1363 = vmatprep.subr.bf16.mxu1 %v3218_v29  ;;  %1404 = vmatprep.subr.bf16.mxu0 %v3242_v30 }
 0x12b   :  { %1364 = vmatpush1.bf16.msra.mxu1 %v3216_v31  ;;  %1405 = vmatpush1.bf16.msra.mxu0 %v3240_v32 }
 0x12c   :  { %1365 = vmatprep.subr.bf16.mxu1 %v3221_v33  ;;  %1406 = vmatprep.subr.bf16.mxu0 %v3248_v34 }
 0x12f   :  { %1366 = vmatpush1.bf16.msra.mxu1 %v3219_v35  ;;  %1407 = vmatpush1.bf16.msra.mxu0 %v3246_v36 }
 0x130   :  { %1367 = vmatprep.subr.bf16.mxu1 %v3227_v37  ;;  %1408 = vmatprep.subr.bf16.mxu0 %v3254_v38  ;;  %v3291_v38 = vld [vmem:[#allocation6 + $0xe8] ss:$16 sps:$4 sm:$0xff]  }
 0x133   :  { %1368 = vmatpush1.bf16.msra.mxu1 %v3225_v39  ;;  %1409 = vmatpush1.bf16.msra.mxu0 %v3252_v40  ;;  %v3294_v39 = vld [vmem:[#allocation6 + $0x2e8] ss:$16 sps:$4 sm:$0xff]  }
 0x134   :  { %1369 = vmatprep.subr.bf16.mxu1 %v3233_v41  ;;  %1410 = vmatprep.subr.bf16.mxu0 %v3260_v42  ;;  %v3299_v42 = vld [vmem:[#allocation6 + $0xcc] ss:$16 sps:$4 sm:$0xff]  }
 0x137   :  { %1370 = vmatpush1.bf16.msra.mxu1 %v3231_v43  ;;  %1411 = vmatpush1.bf16.msra.mxu0 %v3258_v44  ;;  %v3302_v43 = vld [vmem:[#allocation6 + $0x2cc] ss:$16 sps:$4 sm:$0xff]   ;;  %v3297_v44 = vld [vmem:[#allocation6 + $0xc8] ss:$16 sps:$4 sm:$0xff]  }
 0x138   :  { %1371 = vmatprep.subr.bf16.mxu1 %v3239_v45  ;;  %1412 = vmatprep.subr.bf16.mxu0 %v3266_v46  ;;  %v3300_v45 = vld [vmem:[#allocation6 + $0x2c8] ss:$16 sps:$4 sm:$0xff]   ;;  %v3305_v46 = vld [vmem:[#allocation6 + $0xac] ss:$16 sps:$4 sm:$0xff]  }
 0x13b   :  { %1372 = vmatpush1.bf16.msra.mxu1 %v3237_v47  ;;  %1413 = vmatpush1.bf16.msra.mxu0 %v3264_v48  ;;  %v3308_v47 = vld [vmem:[#allocation6 + $0x2ac] ss:$16 sps:$4 sm:$0xff]   ;;  %v3303_v48 = vld [vmem:[#allocation6 + $0xa8] ss:$16 sps:$4 sm:$0xff]  }
 0x13c   :  { %1373 = vmatprep.subr.bf16.mxu1 %v3245_v49  ;;  %1422 = vmatprep.subr.bf16.mxu0 %v3272_v50  ;;  %v3306_v49 = vld [vmem:[#allocation6 + $0x2a8] ss:$16 sps:$4 sm:$0xff]   ;;  %v3311_v50 = vld [vmem:[#allocation6 + $0x8c] ss:$16 sps:$4 sm:$0xff]  }
 0x13f   :  { %1374 = vmatpush2.bf16.msra.mxu1 %v3243_v51  ;;  %1423 = vmatpush2.bf16.msra.mxu0 %v3270_v52  ;;  %v3314_v51 = vld [vmem:[#allocation6 + $0x28c] ss:$16 sps:$4 sm:$0xff]   ;;  %v3309_v52 = vld [vmem:[#allocation6 + $0x88] ss:$16 sps:$4 sm:$0xff]  }
 0x140   :  { %1375 = vmatprep.subr.bf16.mxu1 %v3251_v53  ;;  %1424 = vmatprep.subr.bf16.mxu0 %v3278_v54  ;;  %v3312_v53 = vld [vmem:[#allocation6 + $0x288] ss:$16 sps:$4 sm:$0xff]   ;;  %v3317_v54 = vld [vmem:[#allocation6 + $0x6c] ss:$16 sps:$4 sm:$0xff]  }
 0x143   :  { %1376 = vmatpush2.bf16.msra.mxu1 %v3249_v55  ;;  %1425 = vmatpush2.bf16.msra.mxu0 %v3276_v56  ;;  %v3320_v55 = vld [vmem:[#allocation6 + $0x26c] ss:$16 sps:$4 sm:$0xff]   ;;  %v3315_v56 = vld [vmem:[#allocation6 + $0x68] ss:$16 sps:$4 sm:$0xff]  }
 0x144   :  { %1377 = vmatprep.subr.bf16.mxu1 %v3257_v57  ;;  %1426 = vmatprep.subr.bf16.mxu0 %v3284_v2  ;;  %v3318_v57 = vld [vmem:[#allocation6 + $0x268] ss:$16 sps:$4 sm:$0xff]   ;;  %v3335_v2 = vld [vmem:[#allocation6 + $0xc] ss:$16 sps:$4 sm:$0xff]  }
 0x147   :  { %1378 = vmatpush2.bf16.msra.mxu1 %v3255_v58  ;;  %1427 = vmatpush2.bf16.msra.mxu0 %v3282_v7  ;;  %v3323_v58 = vld [vmem:[#allocation6 + $0x4c] ss:$16 sps:$4 sm:$0xff]   ;;  %v3333_v7 = vld [vmem:[#allocation6 + $0x8] ss:$16 sps:$4 sm:$0xff]  }
 0x148   :  { %1379 = vmatprep.subr.bf16.mxu1 %v3263_v59  ;;  %1428 = vmatprep.subr.bf16.mxu0 %v3290_v9  ;;  %v3326_v59 = vld [vmem:[#allocation6 + $0x24c] ss:$16 sps:$4 sm:$0xff]  }
 0x149   :  { %v3341_v9 = vld [vmem:[#allocation6 + $0x1ec] ss:$16 sps:$4 sm:$0xff]  }
 0x14b   :  { %1380 = vmatpush2.bf16.msra.mxu1 %v3261_v60  ;;  %1429 = vmatpush2.bf16.msra.mxu0 %v3288_v11  ;;  %v3321_v60 = vld [vmem:[#allocation6 + $0x48] ss:$16 sps:$4 sm:$0xff]  }
 0x14c   :  { %1381 = vmatprep.subr.bf16.mxu1 %v3269_v61  ;;  %1439 = vmatprep.subr.bf16.mxu0 %v3293_v12  ;;  %v3324_v61 = vld [vmem:[#allocation6 + $0x248] ss:$16 sps:$4 sm:$0xff]  }
 0x14d   :  { %v3339_v11 = vld [vmem:[#allocation6 + $0x1e8] ss:$16 sps:$4 sm:$0xff]  }
 0x14e   :  { %v3342_v12 = vld [vmem:[#allocation6 + $0x368] ss:$16 sps:$4 sm:$0xff]  }
 0x14f   :  { %1382 = vmatpush2.bf16.msra.mxu1 %v3267_v62  ;;  %v3329_v62 = vld [vmem:[#allocation6 + $0x2c] ss:$16 sps:$4 sm:$0xff]  }
 0x150   :  { %1383 = vmatprep.subr.bf16.mxu1 %v3275_v63  ;;  %v3332_v63 = vld [vmem:[#allocation6 + $0x22c] ss:$16 sps:$4 sm:$0xff]  }
 0x153   :  { %1384 = vmatpush2.bf16.msra.mxu1 %v3273_v0  ;;  %v3327_v0 = vld [vmem:[#allocation6 + $0x28] ss:$16 sps:$4 sm:$0xff]  }
 0x154   :  { %1385 = vmatprep.subr.bf16.mxu1 %v3281_v1  ;;  %v3330_v1 = vld [vmem:[#allocation6 + $0x228] ss:$16 sps:$4 sm:$0xff]  }
 0x157   :  { %1386 = vmatpush2.bf16.msra.mxu1 %v3279_v5  ;;  %v3338_v5 = vld [vmem:[#allocation6 + $0x20c] ss:$16 sps:$4 sm:$0xff]  }
 0x158   :  { %1387 = vmatprep.subr.bf16.mxu1 %v3287_v8  ;;  %v3336_v8 = vld [vmem:[#allocation6 + $0x208] ss:$16 sps:$4 sm:$0xff]  }
 0x15b   :  { %1388 = vmatpush2.bf16.msra.mxu1 %v3285_v10  ;;  %v3344_v10 = vld [vmem:[#allocation6 + $0x36c] ss:$16 sps:$4 sm:$0xff]  }
 0x15c   :  { %1480 = vmatprep.subr.bf16.mxu1 %v3296_v13  ;;  %v3347_v13 = vld [vmem:[#allocation6 + $0x1cc] ss:$16 sps:$4 sm:$0xff]  }
 0x1de   :  { %v603_v21 = vpop.f32.mrf.mxu1  ;;  %v644_v22 = vpop.f32.mrf.mxu0 }
 0x1df   :  { %v604_v23 = vadd.f32 %v603_v21, %v268_v17  ;;  %v645_v24 = vadd.f32 %v644_v22, %v276_v18  ;;  %v3345_v17 = vld [vmem:[#allocation6 + $0x1c8] ss:$16 sps:$4 sm:$0xff]  }
 0x1e0   :  { %v605_v25 = vpop.f32.mrf.mxu1  ;;  %v646_v26 = vpop.f32.mrf.mxu0  ;;  %v3348_v18 = vld [vmem:[#allocation6 + $0x348] ss:$16 sps:$4 sm:$0xff]  }
 0x1e1   :  { %v606_v27 = vadd.f32 %v605_v25, %v272_v19  ;;  %v647_v28 = vadd.f32 %v646_v26, %v280_v20  ;;  %v651_v29 = vmax.f32 %v604_v23, 0.0  ;;  %v653_v30 = vmax.f32 %v645_v24, 0.0  ;;  %v3353_v19 = vld [vmem:[#allocation6 + $0x1ac] ss:$16 sps:$4 sm:$0xff]   ;;  %v3351_v21 = vld [vmem:[#allocation6 + $0x1a8] ss:$16 sps:$4 sm:$0xff]  }
 0x1e2   :  { %v607_v3 = vpop.f32.mrf.mxu1  ;;  %v648_v31 = vpop.f32.mrf.mxu0  ;;  %v3356_v20 = vld [vmem:[#allocation6 + $0x32c] ss:$16 sps:$4 sm:$0xff]   ;;  %v3354_v22 = vld [vmem:[#allocation6 + $0x328] ss:$16 sps:$4 sm:$0xff]  }
 0x1e3   :  { %v652_v32 = vmax.f32 %v606_v27, 0.0  ;;  %v654_v33 = vmax.f32 %v647_v28, 0.0  ;;  %v3857_v40 = vpack.c.bf16 %v651_v29, %v651_v29  ;;  %v3859_v41 = vpack.c.bf16 %v653_v30, %v653_v30  ;;  %v3359_v23 = vld [vmem:[#allocation6 + $0x18c] ss:$16 sps:$4 sm:$0xff]   ;;  %v3357_v25 = vld [vmem:[#allocation6 + $0x188] ss:$16 sps:$4 sm:$0xff]  }
 0x1e4   :  { %v608_v34 = vpop.f32.mrf.mxu1  ;;  %v649_v35 = vpop.f32.mrf.mxu0  ;;  %v3362_v24 = vld [vmem:[#allocation6 + $0x30c] ss:$16 sps:$4 sm:$0xff]   ;;  %v3360_v26 = vld [vmem:[#allocation6 + $0x308] ss:$16 sps:$4 sm:$0xff]  }
 0x1e5   :  { %v656_v36 = vpack.c.bf16 %v652_v32, %v652_v32  ;;  %v658_v37 = vpack.c.bf16 %v654_v33, %v654_v33  ;;  %v3365_v27 = vld [vmem:[#allocation6 + $0x16c] ss:$16 sps:$4 sm:$0xff]   ;;  %v3363_v28 = vld [vmem:[#allocation6 + $0x168] ss:$16 sps:$4 sm:$0xff]   ;;  %v3375_v34 = vld [vmem:[#allocation7 + $0xe0] ss:$16 sps:$4 sm:$0xff]  }
 0x1e6   :  { %v3368_v29 = vld [vmem:[#allocation6 + $0x14c] ss:$16 sps:$4 sm:$0xff]   ;;  %v3366_v30 = vld [vmem:[#allocation6 + $0x148] ss:$16 sps:$4 sm:$0xff]   ;;  %v3377_v35 = vld [vmem:[#allocation7 + $0xe4] ss:$16 sps:$4 sm:$0xff]  }
 0x1e7   :  { %1389 = vmatprep.mubr.bf16.mxu1 %v656_v36  ;;  %2948 = vmatprep.mubr.msk.bf16.mxu0 %vm1353_vm3, %v658_v37  ;;  %v3371_v3 = vld [vmem:[#allocation6 + $0x12c] ss:$16 sps:$4 sm:$0xff]   ;;  %v3369_v31 = vld [vmem:[#allocation6 + $0x128] ss:$16 sps:$4 sm:$0xff]  }
 0x1e8   :  { %1390 = vmatmul.mubr.bf16.vlgmr.msra.gmra.mxu1 %v3857_v40  ;;  %1431 = vmatmul.mubr.bf16.vlgmr.msra.gmra.mxu0 %v3859_v41  ;;  %v3374_v32 = vld [vmem:[#allocation6 + $0x10c] ss:$16 sps:$4 sm:$0xff]   ;;  %v3372_v33 = vld [vmem:[#allocation6 + $0x108] ss:$16 sps:$4 sm:$0xff]  }
 0x1e9   :  { %1440 = vmatpush1.bf16.msra.mxu0 %v3291_v38  ;;  %1481 = vmatpush1.bf16.msra.mxu1 %v3294_v39  ;;  %v3383_v38 = vld [vmem:[#allocation7 + $0xc4] ss:$16 sps:$4 sm:$0xff]   ;;  %v3386_v39 = vld [vmem:[#allocation7 + $0xcc] ss:$16 sps:$4 sm:$0xff]  }
 0x1ea   :  { %1471 = vmatprep.mubr.bf16.mxu0 %v656_v36  ;;  %2949 = vmatprep.mubr.msk.bf16.mxu1 %vm1353_vm3, %v658_v37  ;;  %v3378_v36 = vld [vmem:[#allocation7 + $0xe8] ss:$16 sps:$4 sm:$0xff]   ;;  %v3380_v37 = vld [vmem:[#allocation7 + $0xec] ss:$16 sps:$4 sm:$0xff]  }
 0x1eb   :  { %1441 = vmatprep.subr.bf16.mxu0 %v3299_v42  ;;  %1482 = vmatprep.subr.bf16.mxu1 %v3302_v43  ;;  %v3384_v42 = vld [vmem:[#allocation7 + $0xc8] ss:$16 sps:$4 sm:$0xff]   ;;  %v3389_v43 = vld [vmem:[#allocation7 + $0xa4] ss:$16 sps:$4 sm:$0xff]  }
 0x1ed   :  { %1442 = vmatpush1.bf16.msra.mxu0 %v3297_v44  ;;  %1483 = vmatpush1.bf16.msra.mxu1 %v3300_v45  ;;  %v3392_v44 = vld [vmem:[#allocation7 + $0xac] ss:$16 sps:$4 sm:$0xff]   ;;  %v3387_v45 = vld [vmem:[#allocation7 + $0xa0] ss:$16 sps:$4 sm:$0xff]  }
 0x1ee   :  { %1443 = vmatprep.subr.bf16.mxu0 %v3305_v46  ;;  %1484 = vmatprep.subr.bf16.mxu1 %v3308_v47  ;;  %v3395_v46 = vld [vmem:[#allocation7 + $0x84] ss:$16 sps:$4 sm:$0xff]   ;;  %v3398_v47 = vld [vmem:[#allocation7 + $0x8c] ss:$16 sps:$4 sm:$0xff]  }
 0x1f1   :  { %1444 = vmatpush1.bf16.msra.mxu0 %v3303_v48  ;;  %1485 = vmatpush1.bf16.msra.mxu1 %v3306_v49  ;;  %v3393_v48 = vld [vmem:[#allocation7 + $0x80] ss:$16 sps:$4 sm:$0xff]   ;;  %v3396_v49 = vld [vmem:[#allocation7 + $0x88] ss:$16 sps:$4 sm:$0xff]  }
 0x1f2   :  { %1445 = vmatprep.subr.bf16.mxu0 %v3311_v50  ;;  %1486 = vmatprep.subr.bf16.mxu1 %v3314_v51  ;;  %v3401_v50 = vld [vmem:[#allocation7 + $0x64] ss:$16 sps:$4 sm:$0xff]   ;;  %v3404_v51 = vld [vmem:[#allocation7 + $0x6c] ss:$16 sps:$4 sm:$0xff]  }
 0x1f5   :  { %1446 = vmatpush1.bf16.msra.mxu0 %v3309_v52  ;;  %1487 = vmatpush1.bf16.msra.mxu1 %v3312_v53  ;;  %v3399_v52 = vld [vmem:[#allocation7 + $0x60] ss:$16 sps:$4 sm:$0xff]   ;;  %v3402_v53 = vld [vmem:[#allocation7 + $0x68] ss:$16 sps:$4 sm:$0xff]  }
 0x1f6   :  { %1447 = vmatprep.subr.bf16.mxu0 %v3317_v54  ;;  %1488 = vmatprep.subr.bf16.mxu1 %v3320_v55  ;;  %v3407_v54 = vld [vmem:[#allocation7 + $0x44] ss:$16 sps:$4 sm:$0xff]   ;;  %v3410_v55 = vld [vmem:[#allocation7 + $0x4c] ss:$16 sps:$4 sm:$0xff]  }
 0x1f9   :  { %1448 = vmatpush1.bf16.msra.mxu0 %v3315_v56  ;;  %1489 = vmatpush1.bf16.msra.mxu1 %v3318_v57  ;;  %v3405_v56 = vld [vmem:[#allocation7 + $0x40] ss:$16 sps:$4 sm:$0xff]   ;;  %v3408_v57 = vld [vmem:[#allocation7 + $0x48] ss:$16 sps:$4 sm:$0xff]  }
 0x1fa   :  { %1449 = vmatprep.subr.bf16.mxu0 %v3323_v58  ;;  %1490 = vmatprep.subr.bf16.mxu1 %v3326_v59  ;;  %v3411_v58 = vld [vmem:[#allocation7 + $0x20] ss:$16 sps:$4 sm:$0xff]   ;;  %v3413_v59 = vld [vmem:[#allocation7 + $0x24] ss:$16 sps:$4 sm:$0xff]  }
 0x1fd   :  { %1450 = vmatpush1.bf16.msra.mxu0 %v3321_v60  ;;  %1491 = vmatpush1.bf16.msra.mxu1 %v3324_v61  ;;  %v3414_v60 = vld [vmem:[#allocation7 + $0x28] ss:$16 sps:$4 sm:$0xff]   ;;  %v3416_v61 = vld [vmem:[#allocation7 + $0x2c] ss:$16 sps:$4 sm:$0xff]  }
 0x1fe   :  { %1451 = vmatprep.subr.bf16.mxu0 %v3329_v62  ;;  %1492 = vmatprep.subr.bf16.mxu1 %v3332_v63  ;;  %v3419_v62 = vld [vmem:[#allocation7 + $0x4] ss:$16 sps:$4 sm:$0xff]   ;;  %v3422_v63 = vld [vmem:[#allocation7 + $0xc] ss:$16 sps:$4 sm:$0xff]  }
 0x201   :  { %1452 = vmatpush1.bf16.msra.mxu0 %v3327_v0  ;;  %1493 = vmatpush1.bf16.msra.mxu1 %v3330_v1  ;;  %v3417_v0 = vld [vmem:[#allocation7] ss:$16 sps:$4 sm:$0xff]   ;;  %v3420_v1 = vld [vmem:[#allocation7 + $0x8] ss:$16 sps:$4 sm:$0xff]  }
 0x202   :  { %1453 = vmatprep.subr.bf16.mxu0 %v3335_v2  ;;  %1494 = vmatprep.subr.bf16.mxu1 %v3338_v5  ;;  %v3425_v2 = vld [vmem:[#allocation7 + $0x1e4] ss:$16 sps:$4 sm:$0xff]   ;;  %v3428_v5 = vld [vmem:[#allocation7 + $0x1ec] ss:$16 sps:$4 sm:$0xff]  }
 0x205   :  { %1454 = vmatpush1.bf16.msra.mxu0 %v3333_v7  ;;  %1495 = vmatpush1.bf16.msra.mxu1 %v3336_v8  ;;  %v3423_v7 = vld [vmem:[#allocation7 + $0x1e0] ss:$16 sps:$4 sm:$0xff]   ;;  %v3426_v8 = vld [vmem:[#allocation7 + $0x1e8] ss:$16 sps:$4 sm:$0xff]  }
 0x206   :  { %1455 = vmatprep.subr.bf16.mxu0 %v3341_v9  ;;  %1504 = vmatprep.subr.bf16.mxu1 %v3344_v10  ;;  %v3431_v9 = vld [vmem:[#allocation7 + $0x1c4] ss:$16 sps:$4 sm:$0xff]   ;;  %v3434_v10 = vld [vmem:[#allocation7 + $0x1cc] ss:$16 sps:$4 sm:$0xff]  }
 0x209   :  { %1456 = vmatpush2.bf16.msra.mxu0 %v3339_v11  ;;  %1505 = vmatpush2.bf16.msra.mxu1 %v3342_v12  ;;  %v3429_v11 = vld [vmem:[#allocation7 + $0x1c0] ss:$16 sps:$4 sm:$0xff]   ;;  %v3432_v12 = vld [vmem:[#allocation7 + $0x1c8] ss:$16 sps:$4 sm:$0xff]  }
 0x20a   :  { %1457 = vmatprep.subr.bf16.mxu0 %v3347_v13  ;;  %1506 = vmatprep.subr.bf16.mxu1 %v3350_v15  ;;  %v3437_v13 = vld [vmem:[#allocation7 + $0x1a4] ss:$16 sps:$4 sm:$0xff]   ;;  %v3440_v15 = vld [vmem:[#allocation7 + $0x1ac] ss:$16 sps:$4 sm:$0xff]  }
 0x20d   :  { %1458 = vmatpush2.bf16.msra.mxu0 %v3345_v17  ;;  %1507 = vmatpush2.bf16.msra.mxu1 %v3348_v18  ;;  %v3435_v17 = vld [vmem:[#allocation7 + $0x1a0] ss:$16 sps:$4 sm:$0xff]   ;;  %v3438_v18 = vld [vmem:[#allocation7 + $0x1a8] ss:$16 sps:$4 sm:$0xff]  }
 0x20e   :  { %1459 = vmatprep.subr.bf16.mxu0 %v3353_v19  ;;  %1508 = vmatprep.subr.bf16.mxu1 %v3356_v20  ;;  %v3443_v19 = vld [vmem:[#allocation7 + $0x184] ss:$16 sps:$4 sm:$0xff]   ;;  %v3446_v20 = vld [vmem:[#allocation7 + $0x18c] ss:$16 sps:$4 sm:$0xff]  }
 0x211   :  { %1460 = vmatpush2.bf16.msra.mxu0 %v3351_v21  ;;  %1509 = vmatpush2.bf16.msra.mxu1 %v3354_v22  ;;  %v3441_v21 = vld [vmem:[#allocation7 + $0x180] ss:$16 sps:$4 sm:$0xff]   ;;  %v3444_v22 = vld [vmem:[#allocation7 + $0x188] ss:$16 sps:$4 sm:$0xff]  }
 0x212   :  { %1461 = vmatprep.subr.bf16.mxu0 %v3359_v23  ;;  %1510 = vmatprep.subr.bf16.mxu1 %v3362_v24  ;;  %v3449_v23 = vld [vmem:[#allocation7 + $0x164] ss:$16 sps:$4 sm:$0xff]   ;;  %v3452_v24 = vld [vmem:[#allocation7 + $0x16c] ss:$16 sps:$4 sm:$0xff]  }
 0x215   :  { %1462 = vmatpush2.bf16.msra.mxu0 %v3357_v25  ;;  %1511 = vmatpush2.bf16.msra.mxu1 %v3360_v26  ;;  %v3447_v25 = vld [vmem:[#allocation7 + $0x160] ss:$16 sps:$4 sm:$0xff]   ;;  %v3450_v26 = vld [vmem:[#allocation7 + $0x168] ss:$16 sps:$4 sm:$0xff]  }
 0x216   :  { %1463 = vmatprep.subr.bf16.mxu0 %v3365_v27  ;;  %1953 = vmatprep.subr.bf16.mxu1 %v3377_v35  ;;  %v3455_v27 = vld [vmem:[#allocation7 + $0x144] ss:$16 sps:$4 sm:$0xff]   ;;  %v3470_v35 = vld [vmem:[#allocation7 + $0x10c] ss:$16 sps:$4 sm:$0xff]  }
 0x218   :  { %1513 = vmatmul.mubr.bf16.vlgmr.msra.gmra.mxu1 %v3859_v41  ;;  %v3381_v41 = vld [vmem:[#allocation7 + $0xc0] ss:$16 sps:$4 sm:$0xff]  }
 0x219   :  { %1464 = vmatpush2.bf16.msra.mxu0 %v3363_v28  ;;  %1954 = vmatpush1.bf16.msra.mxu1 %v3375_v34  ;;  %v3458_v28 = vld [vmem:[#allocation7 + $0x14c] ss:$16 sps:$4 sm:$0xff]   ;;  %v3467_v34 = vld [vmem:[#allocation7 + $0x104] ss:$16 sps:$4 sm:$0xff]  }
 0x21a   :  { %1465 = vmatprep.subr.bf16.mxu0 %v3368_v29  ;;  %1955 = vmatprep.subr.bf16.mxu1 %v3383_v38  ;;  %v3453_v29 = vld [vmem:[#allocation7 + $0x140] ss:$16 sps:$4 sm:$0xff]   ;;  %v3473_v38 = vld [vmem:[#allocation9 + $0x74] ss:$8 sps:$4 sm:$0xff]  }
 0x21d   :  { %1466 = vmatpush2.bf16.msra.mxu0 %v3366_v30  ;;  %1956 = vmatpush1.bf16.msra.mxu1 %v3381_v41  ;;  %v3456_v30 = vld [vmem:[#allocation7 + $0x148] ss:$16 sps:$4 sm:$0xff]  }
 0x21e   :  { %1467 = vmatprep.subr.bf16.mxu0 %v3371_v3  ;;  %1957 = vmatprep.subr.bf16.mxu1 %v3389_v43  ;;  %v3461_v3 = vld [vmem:[#allocation7 + $0x124] ss:$16 sps:$4 sm:$0xff]  }
 0x21f   :  { %v771_v41 = vld [vmem:[%s3919_s8 + $0x6] sm:$0xf] }
 0x220   :  { %v780_v43 = vrot.slane %v771_v41, %v3838_v6 }
 0x221   :  { %1468 = vmatpush2.bf16.msra.mxu0 %v3369_v31  ;;  %1958 = vmatpush1.bf16.msra.mxu1 %v3387_v45  ;;  %v3464_v31 = vld [vmem:[#allocation7 + $0x12c] ss:$16 sps:$4 sm:$0xff]  }
 0x222   :  { %1469 = vmatprep.subr.bf16.mxu0 %v3374_v32  ;;  %1959 = vmatprep.subr.bf16.mxu1 %v3395_v46  ;;  %v3459_v32 = vld [vmem:[#allocation7 + $0x120] ss:$16 sps:$4 sm:$0xff]  }
 0x225   :  { %1470 = vmatpush2.bf16.msra.mxu0 %v3372_v33  ;;  %1960 = vmatpush1.bf16.msra.mxu1 %v3393_v48  ;;  %v3462_v33 = vld [vmem:[#allocation7 + $0x128] ss:$16 sps:$4 sm:$0xff]  }
 0x226   :  { %1994 = vmatprep.subr.bf16.mxu0 %v3380_v37  ;;  %1961 = vmatprep.subr.bf16.mxu1 %v3401_v50  ;;  %v3468_v37 = vld [vmem:[#allocation7 + $0x108] ss:$16 sps:$4 sm:$0xff]  }
 0x228   :  { %1472 = vmatmul.mubr.bf16.vlgmr.msra.gmra.mxu0 %v3857_v40  ;;  %v3390_v40 = vld [vmem:[#allocation7 + $0xa8] ss:$16 sps:$4 sm:$0xff]  }
 0x229   :  { %1995 = vmatpush1.bf16.msra.mxu0 %v3378_v36  ;;  %1962 = vmatpush1.bf16.msra.mxu1 %v3399_v52  ;;  %v3465_v36 = vld [vmem:[#allocation7 + $0x100] ss:$16 sps:$4 sm:$0xff]  }
 0x22a   :  { %1996 = vmatprep.subr.bf16.mxu0 %v3386_v39  ;;  %1963 = vmatprep.subr.bf16.mxu1 %v3407_v54  ;;  %v3488_v39 = vld [vmem:[#allocation9 + $0x174] ss:$8 sps:$4 sm:$0xff]  }
 0x22d   :  { %1997 = vmatpush1.bf16.msra.mxu0 %v3384_v42  ;;  %1964 = vmatpush1.bf16.msra.mxu1 %v3405_v56  ;;  %v776_v42 = vrot.slane %v771_v41, %v3832_v4 }
 0x22e   :  { %1998 = vmatprep.subr.bf16.mxu0 %v3392_v44  ;;  %1965 = vmatprep.subr.bf16.mxu1 %v3413_v59 }
 0x231   :  { %1999 = vmatpush1.bf16.msra.mxu0 %v3390_v40  ;;  %1966 = vmatpush1.bf16.msra.mxu1 %v3411_v58 }
 0x232   :  { %2000 = vmatprep.subr.bf16.mxu0 %v3398_v47  ;;  %1967 = vmatprep.subr.bf16.mxu1 %v3419_v62 }
 0x235   :  { %2001 = vmatpush1.bf16.msra.mxu0 %v3396_v49  ;;  %1968 = vmatpush1.bf16.msra.mxu1 %v3417_v0 }
 0x236   :  { %2002 = vmatprep.subr.bf16.mxu0 %v3404_v51  ;;  %1969 = vmatprep.subr.bf16.mxu1 %v3425_v2 }
 0x239   :  { %2003 = vmatpush1.bf16.msra.mxu0 %v3402_v53  ;;  %1970 = vmatpush2.bf16.msra.mxu1 %v3423_v7 }
 0x23a   :  { %2004 = vmatprep.subr.bf16.mxu0 %v3410_v55  ;;  %1971 = vmatprep.subr.bf16.mxu1 %v3431_v9 }
 0x23d   :  { %2005 = vmatpush1.bf16.msra.mxu0 %v3408_v57  ;;  %1972 = vmatpush2.bf16.msra.mxu1 %v3429_v11 }
 0x23e   :  { %2006 = vmatprep.subr.bf16.mxu0 %v3416_v61  ;;  %1973 = vmatprep.subr.bf16.mxu1 %v3437_v13  ;;  %v788_v61 = vrot.slane %v771_v41, %v3851_v16 }
 0x241   :  { %2007 = vmatpush1.bf16.msra.mxu0 %v3414_v60  ;;  %1974 = vmatpush2.bf16.msra.mxu1 %v3435_v17  ;;  %v784_v60 = vrot.slane %v771_v41, %v3845_v14  ;;  %v3506_v41 = vld [vmem:[#allocation9 + $0x144] ss:$8 sps:$4 sm:$0xff]  }
 0x242   :  { %2008 = vmatprep.subr.bf16.mxu0 %v3422_v63  ;;  %1975 = vmatprep.subr.bf16.mxu1 %v3443_v19 }
 0x245   :  { %2009 = vmatpush1.bf16.msra.mxu0 %v3420_v1  ;;  %1976 = vmatpush2.bf16.msra.mxu1 %v3441_v21 }
 0x246   :  { %2010 = vmatprep.subr.bf16.mxu0 %v3428_v5  ;;  %1977 = vmatprep.subr.bf16.mxu1 %v3449_v23 }
 0x249   :  { %2011 = vmatpush2.bf16.msra.mxu0 %v3426_v8  ;;  %1978 = vmatpush2.bf16.msra.mxu1 %v3447_v25 }
 0x24a   :  { %2012 = vmatprep.subr.bf16.mxu0 %v3434_v10  ;;  %1979 = vmatprep.subr.bf16.mxu1 %v3455_v27 }
 0x24d   :  { %2013 = vmatpush2.bf16.msra.mxu0 %v3432_v12  ;;  %1980 = vmatpush2.bf16.msra.mxu1 %v3453_v29  ;;  %v3471_v29 = vld [vmem:[#allocation9 + $0x70] ss:$8 sps:$4 sm:$0xff]  }
 0x24e   :  { %2014 = vmatprep.subr.bf16.mxu0 %v3440_v15  ;;  %1981 = vmatprep.subr.bf16.mxu1 %v3461_v3  ;;  %v2950_v15 = vld.sshfl [vmem:[%s3912_s1] sm:$0x33 pattern:$0x76325410] }
 0x24f   :  { %v1538_v17 = vcombine.high %v2950_v15, %v2950_v15 }
 0x251   :  { %2015 = vmatpush2.bf16.msra.mxu0 %v3438_v18  ;;  %1982 = vmatpush2.bf16.msra.mxu1 %v3459_v32  ;;  %v3494_v32 = vld [vmem:[#allocation9 + $0x164] ss:$8 sps:$4 sm:$0xff]  }
 0x252   :  { %2016 = vmatprep.subr.bf16.mxu0 %v3446_v20  ;;  %1983 = vmatprep.subr.bf16.mxu1 %v3467_v34  ;;  %v3492_v34 = vld [vmem:[#allocation9 + $0x160] ss:$8 sps:$4 sm:$0xff]  }
 0x255   :  { %2017 = vmatpush2.bf16.msra.mxu0 %v3444_v22  ;;  %1984 = vmatpush2.bf16.msra.mxu1 %v3465_v36  ;;  %v3500_v36 = vld [vmem:[#allocation9 + $0x154] ss:$8 sps:$4 sm:$0xff]  }
 0x256   :  { %2018 = vmatprep.subr.bf16.mxu0 %v3452_v24  ;;  %2394 = vmatprep.subr.bf16.mxu1 %v3473_v38  ;;  %v3498_v38 = vld [vmem:[#allocation9 + $0x150] ss:$8 sps:$4 sm:$0xff]  }
 0x259   :  { %2019 = vmatpush2.bf16.msra.mxu0 %v3450_v26 }
 0x25a   :  { %2020 = vmatprep.subr.bf16.mxu0 %v3458_v28 }
 0x25d   :  { %2021 = vmatpush2.bf16.msra.mxu0 %v3456_v30  ;;  %v3486_v30 = vld [vmem:[#allocation9 + $0x170] ss:$8 sps:$4 sm:$0xff]  }
 0x25e   :  { %2022 = vmatprep.subr.bf16.mxu0 %v3464_v31  ;;  %v3476_v31 = vld [vmem:[#allocation9 + $0x64] ss:$8 sps:$4 sm:$0xff]  }
 0x261   :  { %2023 = vmatpush2.bf16.msra.mxu0 %v3462_v33  ;;  %v3474_v33 = vld [vmem:[#allocation9 + $0x60] ss:$8 sps:$4 sm:$0xff]  }
 0x262   :  { %2024 = vmatprep.subr.bf16.mxu0 %v3470_v35  ;;  %v3479_v35 = vld [vmem:[#allocation9 + $0x54] ss:$8 sps:$4 sm:$0xff]  }
 0x265   :  { %2025 = vmatpush2.bf16.msra.mxu0 %v3468_v37  ;;  %v3477_v37 = vld [vmem:[#allocation9 + $0x50] ss:$8 sps:$4 sm:$0xff]  }
 0x266   :  { %2435 = vmatprep.subr.bf16.mxu0 %v3488_v39  ;;  %v3482_v39 = vld [vmem:[#allocation9 + $0x44] ss:$8 sps:$4 sm:$0xff]  }
 0x2a8   :  { %v1391_v44 = vpop.f32.mrf.mxu1  ;;  %v1432_v45 = vpop.f32.mrf.mxu0 }
 0x2a9   :  { %v1392_v40 = vadd.f32 %v1391_v44, %v776_v42  ;;  %v3480_v42 = vld [vmem:[#allocation9 + $0x40] ss:$8 sps:$4 sm:$0xff]   ;;  %v3485_v44 = vld [vmem:[#allocation9 + $0x34] ss:$8 sps:$4 sm:$0xff]  }
 0x2aa   :  { %v1393_v46 = vpop.f32.mrf.mxu1  ;;  %v1434_v47 = vpop.f32.mrf.mxu0 }
 0x2ab   :  { %v1394_v48 = vadd.f32 %v1393_v46, %v780_v43  ;;  %v1433_v51 = vadd.f32 %v1432_v45, %v1392_v40  ;;  %v3504_v43 = vld [vmem:[#allocation9 + $0x140] ss:$8 sps:$4 sm:$0xff]   ;;  %v3512_v45 = vld [vmem:[#allocation9 + $0x134] ss:$8 sps:$4 sm:$0xff]   ;;  %v3483_v40 = vld [vmem:[#allocation9 + $0x30] ss:$8 sps:$4 sm:$0xff]  }
 0x2ac   :  { %v1395_v49 = vpop.f32.mrf.mxu1  ;;  %v1436_v50 = vpop.f32.mrf.mxu0  ;;  %v3510_v46 = vld [vmem:[#allocation9 + $0x130] ss:$8 sps:$4 sm:$0xff]  }
 0x2ad   :  { %v1435_v52 = vadd.f32 %v1434_v47, %v1394_v48  ;;  %v3491_v47 = vld [vmem:[#allocation9 + $0x24] ss:$8 sps:$4 sm:$0xff]   ;;  %v3489_v49 = vld [vmem:[#allocation9 + $0x20] ss:$8 sps:$4 sm:$0xff]  }
 0x2ae   :  { %v1396_v53 = vpop.f32.mrf.mxu1  ;;  %v1437_v54 = vpop.f32.mrf.mxu0  ;;  %v3518_v48 = vld [vmem:[#allocation9 + $0x124] ss:$8 sps:$4 sm:$0xff]   ;;  %v3516_v50 = vld [vmem:[#allocation9 + $0x120] ss:$8 sps:$4 sm:$0xff]  }
 0x2af   :  { %v2730_v55 = vcombine.low %v1433_v51, %v1435_v52  ;;  %v3495_v53 = vld [vmem:[#allocation9 + $0x10] ss:$8 sps:$4 sm:$0xff]  }
 0x2b0   :  { %v3522_v54 = vld [vmem:[#allocation9 + $0x110] ss:$8 sps:$4 sm:$0xff]  }
 0x2b1   :  { %3103 = vst.sshfl [vmem:[%s3920_s9 + $0x8] sm:$0x33 pattern:$0x76325410] %v2730_v55  ;;  %v3503_v55 = vld [vmem:[#allocation9 + $0x4] ss:$8 sps:$4 sm:$0xff]  }
 0x2d8   :  { %v1514_v56 = vpop.f32.mrf.mxu1 }
 0x2da   :  { %v1516_v57 = vpop.f32.mrf.mxu1 }
 0x2dc   :  { %v1518_v58 = vpop.f32.mrf.mxu1 }
 0x2dd   :  { %v3528_v58 = vld [vmem:[#allocation9 + $0x100] ss:$8 sps:$4 sm:$0xff]  }
 0x2de   :  { %v1519_v59 = vpop.f32.mrf.mxu1 }
 0x2df   :  { %v3509_v59 = vld [vmem:[#allocation9 + $0xf4] ss:$8 sps:$4 sm:$0xff]  }
 0x2e8   :  { %v1473_v62 = vpop.f32.mrf.mxu0 }
 0x2e9   :  { %v1474_v63 = vadd.f32 %v1473_v62, %v784_v60  ;;  %v3536_v60 = vld [vmem:[#allocation9 + $0x1b4] ss:$8 sps:$4 sm:$0xff]   ;;  %v3534_v62 = vld [vmem:[#allocation9 + $0x1b0] ss:$8 sps:$4 sm:$0xff]  }
 0x2ea   :  { %v1475_v0 = vpop.f32.mrf.mxu0 }
 0x2eb   :  { %v1515_v1 = vadd.f32 %v1514_v56, %v1474_v63  ;;  %v1476_v2 = vadd.f32 %v1475_v0, %v788_v61  ;;  %v3530_v56 = vld [vmem:[#allocation9 + $0x104] ss:$8 sps:$4 sm:$0xff]   ;;  %v3507_v61 = vld [vmem:[#allocation9 + $0xf0] ss:$8 sps:$4 sm:$0xff]  }
 0x2ec   :  { %v1477_v5 = vpop.f32.mrf.mxu0  ;;  %v3515_v63 = vld [vmem:[#allocation9 + $0xe4] ss:$8 sps:$4 sm:$0xff]  }
 0x2ed   :  { %v1521_v7 = vmul.f32 0.5, %v1515_v1  ;;  %v1517_v8 = vadd.f32 %v1516_v57, %v1476_v2  ;;  %v3501_v57 = vld [vmem:[#allocation9] ss:$8 sps:$4 sm:$0xff]   ;;  %v3542_v0 = vld [vmem:[#allocation9 + $0x1a4] ss:$8 sps:$4 sm:$0xff]  }
 0x2ee   :  { %v1478_v9 = vpop.f32.mrf.mxu0  ;;  %v3540_v2 = vld [vmem:[#allocation9 + $0x1a0] ss:$8 sps:$4 sm:$0xff]   ;;  %v3521_v5 = vld [vmem:[#allocation9 + $0xd4] ss:$8 sps:$4 sm:$0xff]  }
 0x2ef   :  { %v1523_v10 = vmul.f32 1.442695, %v1521_v7  ;;  %v1522_v11 = vmul.f32 0.5, %v1517_v8  ;;  %v2754_v12 = vcombine.low %v1515_v1, %v1517_v8  ;;  %v3513_v1 = vld [vmem:[#allocation9 + $0xe0] ss:$8 sps:$4 sm:$0xff]  }
 0x2f0   :  { %v3519_v7 = vld [vmem:[#allocation9 + $0xd0] ss:$8 sps:$4 sm:$0xff]   ;;  %v3527_v8 = vld [vmem:[#allocation9 + $0xc4] ss:$8 sps:$4 sm:$0xff]   ;;  %v3525_v9 = vld [vmem:[#allocation9 + $0xc0] ss:$8 sps:$4 sm:$0xff]  }
 0x2f1   :  { %3597 = vpow2.f32 %v1523_v10  ;;  %v1525_v13 = vmul.f32 1.442695, %v1522_v11  ;;  %3105 = vst.sshfl [vmem:[%s3920_s9 + $0x10] sm:$0x33 pattern:$0x76325410] %v2754_v12 }
 0x2f2   :  { %v3533_v10 = vld [vmem:[#allocation9 + $0xb4] ss:$8 sps:$4 sm:$0xff]   ;;  %v3531_v11 = vld [vmem:[#allocation9 + $0xb0] ss:$8 sps:$4 sm:$0xff]   ;;  %v3539_v12 = vld [vmem:[#allocation9 + $0xa4] ss:$8 sps:$4 sm:$0xff]  }
 0x2f3   :  { %3599 = vpow2.f32 %v1525_v13  ;;  %v3537_v13 = vld [vmem:[#allocation9 + $0xa0] ss:$8 sps:$4 sm:$0xff]  }
 0x2fe   :  { %v3598_v18 = vpop.eup %3597 }
 0x2ff   :  { %v1541_v19 = vmul.f32 %v3598_v18, %v2950_v15  ;;  %v1527_v21 = vmul.f32 %v3598_v18, %v3598_v18  ;;  %v3545_v15 = vld [vmem:[#allocation9 + $0x94] ss:$8 sps:$4 sm:$0xff]   ;;  %v3543_v18 = vld [vmem:[#allocation9 + $0x90] ss:$8 sps:$4 sm:$0xff]  }
 0x300   :  { %v3600_v20 = vpop.eup %3599 }
 0x301   :  { %v1528_v22 = vmul.f32 %v3600_v20, %v3600_v20  ;;  %v1542_v23 = vmul.f32 %v3600_v20, %v1538_v17  ;;  %v1543_v24 = vadd.f32 %v1541_v19, %v1433_v51  ;;  %v3497_v51 = vld [vmem:[#allocation9 + $0x14] ss:$8 sps:$4 sm:$0xff]   ;;  %v3546_v19 = vld [vmem:[#allocation9 + $0x190] ss:$8 sps:$4 sm:$0xff]   ;;  %v3551_v20 = vld [vmem:[#allocation9 + $0x84] ss:$8 sps:$4 sm:$0xff]  }
 0x302   :  { %v3548_v17 = vld [vmem:[#allocation9 + $0x194] ss:$8 sps:$4 sm:$0xff]  }
 0x303   :  { %v2742_v25 = vcombine.low %v1527_v21, %v1528_v22  ;;  %v1544_v26 = vadd.f32 %v1542_v23, %v1435_v52  ;;  %v1545_v3 = vpack.c.bf16 %v1543_v24, %v1543_v24  ;;  %v3524_v52 = vld [vmem:[#allocation9 + $0x114] ss:$8 sps:$4 sm:$0xff]   ;;  %v3554_v21 = vld [vmem:[#allocation9 + $0x184] ss:$8 sps:$4 sm:$0xff]   ;;  %v3549_v22 = vld [vmem:[#allocation9 + $0x80] ss:$8 sps:$4 sm:$0xff]  }
 0x304   :  { %v3552_v23 = vld [vmem:[#allocation9 + $0x180] ss:$8 sps:$4 sm:$0xff]  }
 0x305   :  { %3104 = vst.sshfl [vmem:[%s3920_s9 + $0xc] sm:$0x33 pattern:$0x76325410] %v2742_v25  ;;  %v1546_v27 = vpack.c.bf16 %v1544_v26, %v1544_v26  ;;  %v2718_v28 = vcombine.low %v1543_v24, %v1544_v26  ;;  %v3557_v24 = vld [vmem:[#allocation10 + $0x74] ss:$8 sps:$4 sm:$0xff]  }
 0x306   :  { %v1611_v25 = vld [vmem:[%s3919_s8 + $0xa] sm:$0xf] }
 0x307   :  { %1985 = vmatprep.mubr.bf16.mxu1 %v1546_v27  ;;  %3102 = vst.sshfl [vmem:[%s3920_s9 + $0x4] sm:$0x33 pattern:$0x76325410] %v2718_v28  ;;  %2026 = vmatprep.mubr.bf16.mxu0 %v1546_v27  ;;  %v1616_v26 = vrot.slane %v1611_v25, %v3832_v4  ;;  %v1624_v27 = vrot.slane %v1611_v25, %v3845_v14 }
 0x308   :  { %1986 = vmatmul.mubr.bf16.vlgmr.msra.gmra.mxu1 %v1545_v3  ;;  %2027 = vmatmul.mubr.bf16.vlgmr.msra.gmra.mxu0 %v1545_v3  ;;  %v1620_v28 = vrot.slane %v1611_v25, %v3838_v6 }
 0x309   :  { %2395 = vmatpush1.bf16.msra.mxu1 %v3471_v29  ;;  %2436 = vmatpush1.bf16.msra.mxu0 %v3486_v30  ;;  %v1628_v29 = vrot.slane %v1611_v25, %v3851_v16 }
 0x30a   :  { %2396 = vmatprep.subr.bf16.mxu1 %v3476_v31  ;;  %2437 = vmatprep.subr.bf16.mxu0 %v3494_v32 }
 0x30d   :  { %2397 = vmatpush1.bf16.msra.mxu1 %v3474_v33  ;;  %2438 = vmatpush1.bf16.msra.mxu0 %v3492_v34 }
 0x30e   :  { %2398 = vmatprep.subr.bf16.mxu1 %v3479_v35  ;;  %2439 = vmatprep.subr.bf16.mxu0 %v3500_v36 }
 0x311   :  { %2399 = vmatpush1.bf16.msra.mxu1 %v3477_v37  ;;  %2440 = vmatpush1.bf16.msra.mxu0 %v3498_v38 }
 0x312   :  { %2400 = vmatprep.subr.bf16.mxu1 %v3482_v39  ;;  %2441 = vmatprep.subr.bf16.mxu0 %v3506_v41 }
 0x315   :  { %2401 = vmatpush1.bf16.msra.mxu1 %v3480_v42  ;;  %2442 = vmatpush1.bf16.msra.mxu0 %v3504_v43 }
 0x316   :  { %2402 = vmatprep.subr.bf16.mxu1 %v3485_v44  ;;  %2443 = vmatprep.subr.bf16.mxu0 %v3512_v45 }
 0x319   :  { %2403 = vmatpush1.bf16.msra.mxu1 %v3483_v40  ;;  %2444 = vmatpush1.bf16.msra.mxu0 %v3510_v46  ;;  %v3555_v46 = vld [vmem:[#allocation10 + $0x70] ss:$8 sps:$4 sm:$0xff]  }
 0x31a   :  { %2404 = vmatprep.subr.bf16.mxu1 %v3491_v47  ;;  %2445 = vmatprep.subr.bf16.mxu0 %v3518_v48  ;;  %v3560_v48 = vld [vmem:[#allocation10 + $0x64] ss:$8 sps:$4 sm:$0xff]  }
 0x31d   :  { %2405 = vmatpush1.bf16.msra.mxu1 %v3489_v49  ;;  %2446 = vmatpush1.bf16.msra.mxu0 %v3516_v50  ;;  %v3558_v49 = vld [vmem:[#allocation10 + $0x60] ss:$8 sps:$4 sm:$0xff]   ;;  %v3563_v50 = vld [vmem:[#allocation10 + $0x54] ss:$8 sps:$4 sm:$0xff]  }
 0x31e   :  { %2406 = vmatprep.subr.bf16.mxu1 %v3497_v51  ;;  %2447 = vmatprep.subr.bf16.mxu0 %v3524_v52  ;;  %v3561_v51 = vld [vmem:[#allocation10 + $0x50] ss:$8 sps:$4 sm:$0xff]   ;;  %v3566_v52 = vld [vmem:[#allocation10 + $0x44] ss:$8 sps:$4 sm:$0xff]  }
 0x321   :  { %2407 = vmatpush1.bf16.msra.mxu1 %v3495_v53  ;;  %2448 = vmatpush1.bf16.msra.mxu0 %v3522_v54  ;;  %v3564_v53 = vld [vmem:[#allocation10 + $0x40] ss:$8 sps:$4 sm:$0xff]   ;;  %v3569_v54 = vld [vmem:[#allocation10 + $0x34] ss:$8 sps:$4 sm:$0xff]  }
 0x322   :  { %2408 = vmatprep.subr.bf16.mxu1 %v3503_v55  ;;  %2449 = vmatprep.subr.bf16.mxu0 %v3530_v56  ;;  %v3567_v55 = vld [vmem:[#allocation10 + $0x30] ss:$8 sps:$4 sm:$0xff]   ;;  %v3572_v56 = vld [vmem:[#allocation10 + $0x24] ss:$8 sps:$4 sm:$0xff]  }
 0x325   :  { %2409 = vmatpush1.bf16.msra.mxu1 %v3501_v57  ;;  %2450 = vmatpush1.bf16.msra.mxu0 %v3528_v58  ;;  %v3570_v57 = vld [vmem:[#allocation10 + $0x20] ss:$8 sps:$4 sm:$0xff]   ;;  %v3575_v58 = vld [vmem:[#allocation10 + $0x14] ss:$8 sps:$4 sm:$0xff]  }
 0x326   :  { %2410 = vmatprep.subr.bf16.mxu1 %v3509_v59  ;;  %2459 = vmatprep.subr.bf16.mxu0 %v3536_v60  ;;  %v3573_v59 = vld [vmem:[#allocation10 + $0x10] ss:$8 sps:$4 sm:$0xff]   ;;  %v3578_v60 = vld [vmem:[#allocation10 + $0x4] ss:$8 sps:$4 sm:$0xff]  }
 0x329   :  { %2411 = vmatpush2.bf16.msra.mxu1 %v3507_v61  ;;  %2460 = vmatpush2.bf16.msra.mxu0 %v3534_v62  ;;  %v3576_v61 = vld [vmem:[#allocation10] ss:$8 sps:$4 sm:$0xff]   ;;  %v3581_v62 = vld [vmem:[#allocation10 + $0xd4] ss:$8 sps:$4 sm:$0xff]  }
 0x32a   :  { %2412 = vmatprep.subr.bf16.mxu1 %v3515_v63  ;;  %2461 = vmatprep.subr.bf16.mxu0 %v3542_v0  ;;  %v3579_v63 = vld [vmem:[#allocation10 + $0xd0] ss:$8 sps:$4 sm:$0xff]   ;;  %v3584_v0 = vld [vmem:[#allocation10 + $0xc4] ss:$8 sps:$4 sm:$0xff]  }
 0x32d   :  { %2413 = vmatpush2.bf16.msra.mxu1 %v3513_v1  ;;  %2462 = vmatpush2.bf16.msra.mxu0 %v3540_v2  ;;  %v3582_v1 = vld [vmem:[#allocation10 + $0xc0] ss:$8 sps:$4 sm:$0xff]   ;;  %v3587_v2 = vld [vmem:[#allocation10 + $0xb4] ss:$8 sps:$4 sm:$0xff]  }
 0x32e   :  { %2414 = vmatprep.subr.bf16.mxu1 %v3521_v5  ;;  %2463 = vmatprep.subr.bf16.mxu0 %v3548_v17  ;;  %v3585_v5 = vld [vmem:[#allocation10 + $0xb0] ss:$8 sps:$4 sm:$0xff]  }
 0x331   :  { %2415 = vmatpush2.bf16.msra.mxu1 %v3519_v7  ;;  %2464 = vmatpush2.bf16.msra.mxu0 %v3546_v19  ;;  %v3590_v7 = vld [vmem:[#allocation10 + $0xa4] ss:$8 sps:$4 sm:$0xff]  }
 0x332   :  { %2416 = vmatprep.subr.bf16.mxu1 %v3527_v8  ;;  %2465 = vmatprep.subr.bf16.mxu0 %v3554_v21  ;;  %v3588_v8 = vld [vmem:[#allocation10 + $0xa0] ss:$8 sps:$4 sm:$0xff]  }
 0x335   :  { %2417 = vmatpush2.bf16.msra.mxu1 %v3525_v9  ;;  %2466 = vmatpush2.bf16.msra.mxu0 %v3552_v23  ;;  %v3593_v9 = vld [vmem:[#allocation10 + $0x94] ss:$8 sps:$4 sm:$0xff]  }
 0x336   :  { %2418 = vmatprep.subr.bf16.mxu1 %v3533_v10  ;;  %2663 = vmatprep.subr.bf16.mxu0 %v3557_v24  ;;  %v3591_v10 = vld [vmem:[#allocation10 + $0x90] ss:$8 sps:$4 sm:$0xff]  }
 0x339   :  { %2419 = vmatpush2.bf16.msra.mxu1 %v3531_v11  ;;  %v3596_v11 = vld [vmem:[#allocation10 + $0x84] ss:$8 sps:$4 sm:$0xff]  }
 0x33a   :  { %2420 = vmatprep.subr.bf16.mxu1 %v3539_v12  ;;  %v3594_v12 = vld [vmem:[#allocation10 + $0x80] ss:$8 sps:$4 sm:$0xff]  }
 0x33d   :  { %2421 = vmatpush2.bf16.msra.mxu1 %v3537_v13  ;;  %v2099_v13 = vld [vmem:[%s3919_s8 + $0xe] sm:$0x3] }
 0x33e   :  { %2422 = vmatprep.subr.bf16.mxu1 %v3545_v15  ;;  %v2104_v15 = vrot.slane %v2099_v13, %v3832_v4  ;;  %v2108_v17 = vrot.slane %v2099_v13, %v3838_v6 }
 0x341   :  { %2423 = vmatpush2.bf16.msra.mxu1 %v3543_v18 }
 0x342   :  { %2424 = vmatprep.subr.bf16.mxu1 %v3551_v20 }
 0x345   :  { %2425 = vmatpush2.bf16.msra.mxu1 %v3549_v22 }
 0x3c8   :  { %v1987_v30 = vpop.f32.mrf.mxu1  ;;  %v2028_v3 = vpop.f32.mrf.mxu0 }
 0x3c9   :  { %v1988_v31 = vadd.f32 %v1987_v30, %v1616_v26  ;;  %v2029_v32 = vadd.f32 %v2028_v3, %v1624_v27 }
 0x3ca   :  { %v1989_v33 = vpop.f32.mrf.mxu1  ;;  %v2030_v34 = vpop.f32.mrf.mxu0 }
 0x3cb   :  { %v1990_v35 = vadd.f32 %v1989_v33, %v1620_v28  ;;  %v2031_v36 = vadd.f32 %v2030_v34, %v1628_v29  ;;  %v2035_v37 = vmax.f32 %v1988_v31, 0.0  ;;  %v2037_v38 = vmax.f32 %v2029_v32, 0.0  ;;  %v2508_v33 = vld [vmem:[%s3919_s8 + $0x10] sm:$0x3] }
 0x3cc   :  { %v1991_v39 = vpop.f32.mrf.mxu1  ;;  %v2032_v41 = vpop.f32.mrf.mxu0  ;;  %v2513_v34 = vrot.slane %v2508_v33, %v3832_v4 }
 0x3cd   :  { %v2036_v42 = vmax.f32 %v1990_v35, 0.0  ;;  %v2038_v43 = vmax.f32 %v2031_v36, 0.0  ;;  %v2039_v16 = vpack.c.bf16 %v2035_v37, %v2035_v37  ;;  %v2041_v47 = vpack.c.bf16 %v2037_v38, %v2037_v38 }
 0x3ce   :  { %v1992_v44 = vpop.f32.mrf.mxu1  ;;  %v2033_v14 = vpop.f32.mrf.mxu0  ;;  %v2517_v35 = vrot.slane %v2508_v33, %v3838_v6 }
 0x3cf   :  { %v2040_v45 = vpack.c.bf16 %v2036_v42, %v2036_v42  ;;  %v2042_v40 = vpack.c.bf16 %v2038_v43, %v2038_v43 }
 0x3d1   :  { %2426 = vmatprep.mubr.bf16.mxu1 %v2040_v45  ;;  %3071 = vmatprep.mubr.msk.bf16.mxu0 %vm1353_vm3, %v2042_v40 }
 0x3d2   :  { %2427 = vmatmul.mubr.bf16.vlgmr.msra.gmra.mxu1 %v2039_v16  ;;  %2468 = vmatmul.mubr.bf16.vlgmr.msra.gmra.mxu0 %v2041_v47 }
 0x3d3   :  { %2664 = vmatpush1.bf16.msra.mxu0 %v3555_v46 }
 0x3d4   :  { %2665 = vmatprep.subr.bf16.mxu0 %v3560_v48 }
 0x3d7   :  { %2666 = vmatpush1.bf16.msra.mxu0 %v3558_v49 }
 0x3d8   :  { %2667 = vmatprep.subr.bf16.mxu0 %v3563_v50 }
 0x3db   :  { %2668 = vmatpush1.bf16.msra.mxu0 %v3561_v51 }
 0x3dc   :  { %2669 = vmatprep.subr.bf16.mxu0 %v3566_v52 }
 0x3df   :  { %2670 = vmatpush1.bf16.msra.mxu0 %v3564_v53 }
 0x3e0   :  { %2671 = vmatprep.subr.bf16.mxu0 %v3569_v54 }
 0x3e3   :  { %2672 = vmatpush1.bf16.msra.mxu0 %v3567_v55 }
 0x3e4   :  { %2673 = vmatprep.subr.bf16.mxu0 %v3572_v56 }
 0x3e7   :  { %2674 = vmatpush1.bf16.msra.mxu0 %v3570_v57 }
 0x3e8   :  { %2675 = vmatprep.subr.bf16.mxu0 %v3575_v58 }
 0x3eb   :  { %2676 = vmatpush1.bf16.msra.mxu0 %v3573_v59 }
 0x3ec   :  { %2677 = vmatprep.subr.bf16.mxu0 %v3578_v60 }
 0x3ef   :  { %2678 = vmatpush1.bf16.msra.mxu0 %v3576_v61 }
 0x3f0   :  { %2683 = vmatprep.subr.bf16.mxu0 %v3581_v62 }
 0x3f3   :  { %2684 = vmatpush2.bf16.msra.mxu0 %v3579_v63 }
 0x3f4   :  { %2685 = vmatprep.subr.bf16.mxu0 %v3584_v0 }
 0x3f7   :  { %2686 = vmatpush2.bf16.msra.mxu0 %v3582_v1 }
 0x3f8   :  { %2687 = vmatprep.subr.bf16.mxu0 %v3587_v2 }
 0x3fb   :  { %2688 = vmatpush2.bf16.msra.mxu0 %v3585_v5 }
 0x3fc   :  { %2689 = vmatprep.subr.bf16.mxu0 %v3590_v7 }
 0x3ff   :  { %2690 = vmatpush2.bf16.msra.mxu0 %v3588_v8 }
 0x400   :  { %2691 = vmatprep.subr.bf16.mxu0 %v3593_v9 }
 0x403   :  { %2692 = vmatpush2.bf16.msra.mxu0 %v3591_v10 }
 0x404   :  { %2693 = vmatprep.subr.bf16.mxu0 %v3596_v11 }
 0x407   :  { %2694 = vmatpush2.bf16.msra.mxu0 %v3594_v12 }
 0x492   :  { %v2428_v18 = vpop.f32.mrf.mxu1  ;;  %v2469_v19 = vpop.f32.mrf.mxu0 }
 0x493   :  { %v2429_v20 = vadd.f32 %v2428_v18, %v2104_v15 }
 0x494   :  { %v2430_v21 = vpop.f32.mrf.mxu1  ;;  %v2471_v22 = vpop.f32.mrf.mxu0 }
 0x495   :  { %v2470_v23 = vadd.f32 %v2469_v19, %v2429_v20  ;;  %v2431_v24 = vadd.f32 %v2430_v21, %v2108_v17 }
 0x496   :  { %v2432_v25 = vpop.f32.mrf.mxu1  ;;  %v2473_v26 = vpop.f32.mrf.mxu0 }
 0x497   :  { %v2472_v27 = vadd.f32 %v2471_v22, %v2431_v24  ;;  %v2476_v28 = vmax.f32 %v2470_v23, 0.0 }
 0x498   :  { %v2433_v29 = vpop.f32.mrf.mxu1  ;;  %v2474_v30 = vpop.f32.mrf.mxu0 }
 0x499   :  { %v2477_v3 = vmax.f32 %v2472_v27, 0.0  ;;  %v2478_v32 = vpack.c.bf16 %v2476_v28, %v2476_v28 }
 0x49b   :  { %v2479_v31 = vpack.c.bf16 %v2477_v3, %v2477_v3 }
 0x49d   :  { %3100 = vmatprep.mubr.msk.bf16.mxu0 %vm565_vm2, %v2479_v31 }
 0x49e   :  { %2696 = vmatmul.mubr.bf16.vlgmr.msra.gmra.mxu0 %v2478_v32 }
 0x55e   :  { %v2697_v36 = vpop.f32.mrf.mxu0 }
 0x55f   :  { %v2698_v38 = vadd.f32 %v2697_v36, %v2513_v34 }
 0x560   :  { %v2699_v37 = vpop.f32.mrf.mxu0 }
 0x561   :  { %v2700_v39 = vadd.f32 %v2699_v37, %v2517_v35 }
 0x562   :  { %v2701_v41 = vpop.f32.mrf.mxu0 }
 0x563   :  { %v2706_v42 = vcombine.low %v2698_v38, %v2700_v39 }
 0x564   :  { %v2702_v43 = vpop.f32.mrf.mxu0 }
 0x565   :  { %3101 = vst.sshfl [vmem:[%s3920_s9] sm:$0x33 pattern:$0x76325410] %v2706_v42 }
 0x566   :  { %2768 = vsyncpa [#allocation3], 1 }
 0x567   :  { %2769 = vsyncpa [#allocation5], 1 }
 0x568   :  { %2770 = vsyncpa [#allocation8], 1 }
 0x569   :  { %2771 = vsyncpa [#allocation11], 1 }

</bundles_post_ra>
